<compile_context>
chip_gen: v7x
topology: tpu7x:2x2x1
jax: 0.10.0
libtpu: 0.0.40
codegen_flags: <defaults>
</compile_context>

<pallas_src>
import functools

import jax
import jax.numpy as jnp
from jax.experimental import pallas as pl
from jax.experimental.pallas import tpu as pltpu

EPS = 1e-5
EXPANSION = 4


# ---------------------------------------------------------------------------
# Fused bottleneck kernel (one image per grid step)
# ---------------------------------------------------------------------------
def _bottleneck_kernel(x_ref, w1_ref, b1_ref, w2_ref, b2_ref, w3_ref, b3_ref,
                       *rest, s, Ho, Wo, C1, has_proj, compute_dtype):
    """x_ref: (s*s*Ho*Wo, Cin) phase-major flattened input.

    Row index = ((rh*s + rw) * Ho + ho) * Wo + wo, i.e. phase (rh, rw) holds
    the original pixels (s*ho + rh, s*wo + rw).  pad_ref is a per-phase
    zero-padded copy of the conv1 output (realises the 3x3 conv's padding=1).
    """
    if has_proj:
        ws_ref, bs_ref, o_ref, pad_ref = rest
    else:
        o_ref, pad_ref = rest

    M2 = Ho * Wo
    x_all = x_ref[...]                                      # (s*s*M2, Cin)

    # ---- conv1 (1x1) + bn1 + relu : all phases in a single matmul --------
    h1 = jnp.dot(x_all, w1_ref[...], preferred_element_type=jnp.float32)
    h1 = jnp.maximum(h1 + b1_ref[...], 0.0)                 # (s*s*M2, C1) f32

    # scatter phases into the zero-padded VMEM scratch (border stays zero)
    pad_ref[...] = jnp.zeros_like(pad_ref)
    for p in range(s * s):
        blk = h1[p * M2:(p + 1) * M2, :].reshape(Ho, Wo, C1)
        pad_ref[p, 1:Ho + 1, 1:Wo + 1, :] = blk

    # ---- conv2 (3x3, stride s, pad 1) + bn2 + relu : 9 shifted matmuls ----
    # out2[ho, wo] = sum_{kh,kw} out1[s*ho + kh - 1, s*wo + kw - 1] @ W2[kh,kw]
    # With kh - 1 = s*qh + rh (floor divmod) the source pixel lives in phase
    # (rh, rw) at position (ho + qh, wo + qw): a *contiguous* window of the
    # padded per-phase scratch -> no strided access needed.
    acc = jnp.zeros((M2, C1), jnp.float32)
    for kh in range(3):
        qh, rh = divmod(kh - 1, s)
        for kw in range(3):
            qw, rw = divmod(kw - 1, s)
            p = rh * s + rw
            tap = pad_ref[p, 1 + qh:1 + qh + Ho, 1 + qw:1 + qw + Wo, :]
            acc = acc + jnp.dot(
                tap.reshape(M2, C1).astype(compute_dtype),
                w2_ref[kh * 3 + kw],
                preferred_element_type=jnp.float32)
    h2 = jnp.maximum(acc + b2_ref[...], 0.0)                # (M2, C1) f32

    # ---- conv3 (1x1) + bn3 + shortcut + relu ------------------------------
    h3 = jnp.dot(h2.astype(compute_dtype), w3_ref[...],
                 preferred_element_type=jnp.float32) + b3_ref[...]
    xs = x_all[0:M2, :]                 # phase (0,0) == x[:, ::s, ::s, :]
    if has_proj:
        res = jnp.dot(xs, ws_ref[...],
                      preferred_element_type=jnp.float32) + bs_ref[...]
    else:
        res = xs.astype(jnp.float32)    # identity shortcut (s==1, Cin==Cout)
    # Output per step is small ((Ho*Wo, Cout)); masked narrow stores are
    # acceptable now that all large intermediates stay in VMEM.
    o_ref[...] = jnp.maximum(h3 + res, 0.0).astype(o_ref.dtype)


# ---------------------------------------------------------------------------
# Host-side glue: BN folding, phase layout, pallas_call wrapper
# ---------------------------------------------------------------------------
def _bn_fold(gamma, beta, mean, var):
    scale = gamma / jnp.sqrt(var + EPS)
    bias = beta - mean * scale
    return scale, bias


@functools.partial(jax.jit, static_argnames=("stride", "compute_dtype"))
def bottleneck_forward(x_nchw, params, *, stride, compute_dtype=jnp.float32):
    N, Cin, H, W = x_nchw.shape
    C1 = params["w1"].shape[0]
    Cout = params["w3"].shape[0]
    s = int(stride)
    if H % s or W % s:
        # TODO(synk): odd spatial sizes with stride>1 need edge-phase handling.
        raise ValueError("spatial dims must be divisible by stride")
    Ho, Wo = H // s, W // s
    has_proj = (s != 1) or (Cin != Cout)
    cdt = compute_dtype

    # phase-major ("space-to-batch") layout, fused into the one NCHW transpose:
    #   (N, Cin, H, W) -> (N, s, s, Ho, Wo, Cin) -> (N, s*s*Ho*Wo, Cin)
    x_ph = x_nchw.reshape(N, Cin, Ho, s, Wo, s)
    x_ph = jnp.transpose(x_ph, (0, 3, 5, 2, 4, 1)).reshape(N, s * s * Ho * Wo, Cin)
    x_ph = x_ph.astype(cdt)

    # fold BN (inference) into conv weights:  conv+bn == (x @ Wf) + bias
    s1, b1 = _bn_fold(*params["bn1"])
    w1f = (params["w1"].reshape(C1, Cin).T * s1[None, :]).astype(cdt)
    s2, b2 = _bn_fold(*params["bn2"])
    w2f = jnp.transpose(params["w2"], (2, 3, 1, 0)) * s2[None, None, None, :]
    w2f = w2f.reshape(9, C1, C1).astype(cdt)                  # (kh*3+kw, Cin, Cout)
    s3, b3 = _bn_fold(*params["bn3"])
    w3f = (params["w3"].reshape(Cout, C1).T * s3[None, :]).astype(cdt)

    args = [x_ph,
            w1f, b1.reshape(1, C1).astype(jnp.float32),
            w2f, b2.reshape(1, C1).astype(jnp.float32),
            w3f, b3.reshape(1, Cout).astype(jnp.float32)]
    in_specs = [
        pl.BlockSpec((None, s * s * Ho * Wo, Cin), lambda n: (n, 0, 0)),
        pl.BlockSpec((Cin, C1), lambda n: (0, 0)),
        pl.BlockSpec((1, C1), lambda n: (0, 0)),
        pl.BlockSpec((9, C1, C1), lambda n: (0, 0, 0)),
        pl.BlockSpec((1, C1), lambda n: (0, 0)),
        pl.BlockSpec((C1, Cout), lambda n: (0, 0)),
        pl.BlockSpec((1, Cout), lambda n: (0, 0)),
    ]
    if has_proj:
        ss_, bs_ = _bn_fold(*params["bns"])
        wsf = (params["ws"].reshape(Cout, Cin).T * ss_[None, :]).astype(cdt)
        args += [wsf, bs_.reshape(1, Cout).astype(jnp.float32)]
        in_specs += [pl.BlockSpec((Cin, Cout), lambda n: (0, 0)),
                     pl.BlockSpec((1, Cout), lambda n: (0, 0))]

    kernel = functools.partial(_bottleneck_kernel, s=s, Ho=Ho, Wo=Wo, C1=C1,
                               has_proj=has_proj, compute_dtype=cdt)

    out = pl.pallas_call(
        kernel,
        out_shape=jax.ShapeDtypeStruct((N, Ho * Wo, Cout), jnp.float32),
        grid=(N,),
        in_specs=in_specs,
        out_specs=pl.BlockSpec((None, Ho * Wo, Cout), lambda n: (n, 0, 0)),
        scratch_shapes=[pltpu.VMEM((s * s, Ho + 2, Wo + 2, C1), jnp.float32)],
        compiler_params=pltpu.CompilerParams(
            dimension_semantics=("parallel",)),
    )(*args)

    out = out.reshape(N, Ho, Wo, Cout)
    return jnp.transpose(out, (0, 3, 1, 2))                   # back to NCHW


# ---------------------------------------------------------------------------
# Parameter init + pure-JAX reference (for validation)
# ---------------------------------------------------------------------------
def init_params(key, in_planes, planes):
    out_planes = EXPANSION * planes
    keys = jax.random.split(key, 8)

    def bn_init(k, c):
        k1, k2, k3, k4 = jax.random.split(k, 4)
        gamma = jax.random.uniform(k1, (c,), jnp.float32, 0.5, 1.5)
        beta = jax.random.normal(k2, (c,), jnp.float32) * 0.1
        mean = jax.random.normal(k3, (c,), jnp.float32) * 0.1
        var = jax.random.uniform(k4, (c,), jnp.float32, 0.5, 1.5)
        return gamma, beta, mean, var

    return {
        "w1": jax.random.normal(keys[0], (planes, in_planes, 1, 1), jnp.float32) * 0.1,
        "bn1": bn_init(keys[1], planes),
        "w2": jax.random.normal(keys[2], (planes, planes, 3, 3), jnp.float32) * 0.1,
        "bn2": bn_init(keys[3], planes),
        "w3": jax.random.normal(keys[4], (out_planes, planes, 1, 1), jnp.float32) * 0.1,
        "bn3": bn_init(keys[5], out_planes),
        "ws": jax.random.normal(keys[6], (out_planes, in_planes, 1, 1), jnp.float32) * 0.1,
        "bns": bn_init(keys[7], out_planes),
    }


def _ref_forward(x, p, stride):
    def conv(x, w, s=1, pad="VALID"):
        return jax.lax.conv_general_dilated(
            x, w, (s, s), pad, dimension_numbers=("NCHW", "OIHW", "NCHW"))

    def bn(x, stats):
        gamma, beta, mean, var = stats
        sc = gamma / jnp.sqrt(var + EPS)
        return x * sc[None, :, None, None] + (beta - mean * sc)[None, :, None, None]

    out = jax.nn.relu(bn(conv(x, p["w1"]), p["bn1"]))
    out = jax.nn.relu(bn(conv(out, p["w2"], stride, [(1, 1), (1, 1)]), p["bn2"]))
    out = bn(conv(out, p["w3"]), p["bn3"])
    Cin, Cout = x.shape[1], p["w3"].shape[0]
    if stride != 1 or Cin != Cout:
        sc = bn(conv(x, p["ws"], stride), p["bns"])
    else:
        sc = x
    return jax.nn.relu(out + sc)


if __name__ == "__main__":
    key = jax.random.PRNGKey(0)
    kx1, kp1, kx2, kp2 = jax.random.split(key, 4)

    # -- config 1: projection shortcut (stride 2, channel expansion) --------
    batch, in_planes, planes, stride, spatial = 2, 16, 8, 2, 16
    x1 = jax.random.normal(kx1, (batch, in_planes, spatial, spatial), jnp.float32)
    p1 = init_params(kp1, in_planes, planes)

    out1 = jax.block_until_ready(bottleneck_forward(x1, p1, stride=stride))
    ref1 = jax.block_until_ready(_ref_forward(x1, p1, stride))
    assert out1.shape == ref1.shape == (batch, EXPANSION * planes,
                                        spatial // stride, spatial // stride)
    assert jnp.allclose(out1, ref1, rtol=1e-4, atol=1e-4), \
        float(jnp.max(jnp.abs(out1 - ref1)))

    # -- config 2: identity shortcut (stride 1, in_planes == expansion*planes)
    in2, planes2, stride2 = 32, 8, 1
    x2 = jax.random.normal(kx2, (batch, in2, spatial, spatial), jnp.float32)
    p2 = init_params(kp2, in2, planes2)
    out2 = jax.block_until_ready(bottleneck_forward(x2, p2, stride=stride2))
    ref2 = jax.block_until_ready(_ref_forward(x2, p2, stride2))
    assert out2.shape == ref2.shape == (batch, EXPANSION * planes2, spatial, spatial)
    assert jnp.allclose(out2, ref2, rtol=1e-4, atol=1e-4), \
        float(jnp.max(jnp.abs(out2 - ref2)))

    # -- bf16 compute path (halves HBM/DMA bytes; native MXU on v6e/v7x) ----
    out_bf16 = jax.block_until_ready(
        bottleneck_forward(x1, p1, stride=stride, compute_dtype=jnp.bfloat16))
    assert jnp.allclose(out_bf16, ref1, rtol=1e-1, atol=1e-1), \
        float(jnp.max(jnp.abs(out_bf16 - ref1)))

    print("KERNEL_OK")
</pallas_src>

<mosaic_0001>
module attributes {stable_mosaic.version = 11 : i64} {
  func.func @_bottleneck_kernel(%arg0: i32, %arg1: memref<1x256x16xf32, #tpu.memory_space<vmem>>, %arg2: memref<16x8xf32, #tpu.memory_space<vmem>>, %arg3: memref<1x8xf32, #tpu.memory_space<vmem>>, %arg4: memref<9x8x8xf32, #tpu.memory_space<vmem>>, %arg5: memref<1x8xf32, #tpu.memory_space<vmem>>, %arg6: memref<8x32xf32, #tpu.memory_space<vmem>>, %arg7: memref<1x32xf32, #tpu.memory_space<vmem>>, %arg8: memref<16x32xf32, #tpu.memory_space<vmem>>, %arg9: memref<1x32xf32, #tpu.memory_space<vmem>>, %arg10: memref<1x64x32xf32, #tpu.memory_space<vmem>>, %arg11: memref<4x10x10x8xf32, #tpu.memory_space<vmem>>) attributes {dimension_semantics = [#tpu.dimension_semantics<parallel>], iteration_bounds = array<i64: 2>, scalar_prefetch = 0 : i64, scratch_operands = 1 : i64, tpu.core_type = #tpu.core_type<tc>, window_params = [{transform_indices = @transform_0, window_bounds = array<i64: 1, 256, 16>}, {pipeline_mode = #tpu.pipeline_mode<synchronous>, transform_indices = @transform_1, window_bounds = array<i64: 16, 8>}, {pipeline_mode = #tpu.pipeline_mode<synchronous>, transform_indices = @transform_2, window_bounds = array<i64: 1, 8>}, {pipeline_mode = #tpu.pipeline_mode<synchronous>, transform_indices = @transform_3, window_bounds = array<i64: 9, 8, 8>}, {pipeline_mode = #tpu.pipeline_mode<synchronous>, transform_indices = @transform_4, window_bounds = array<i64: 1, 8>}, {pipeline_mode = #tpu.pipeline_mode<synchronous>, transform_indices = @transform_5, window_bounds = array<i64: 8, 32>}, {pipeline_mode = #tpu.pipeline_mode<synchronous>, transform_indices = @transform_6, window_bounds = array<i64: 1, 32>}, {pipeline_mode = #tpu.pipeline_mode<synchronous>, transform_indices = @transform_7, window_bounds = array<i64: 16, 32>}, {pipeline_mode = #tpu.pipeline_mode<synchronous>, transform_indices = @transform_8, window_bounds = array<i64: 1, 32>}, {transform_indices = @transform_9, window_bounds = array<i64: 1, 64, 32>}]} {
    %c0 = arith.constant 0 : index
    %c0_0 = arith.constant 0 : index
    %c0_1 = arith.constant 0 : index
    %0 = vector.load %arg1[%c0, %c0_0, %c0_1] : memref<1x256x16xf32, #tpu.memory_space<vmem>>, vector<1x256x16xf32>
    %1 = vector.shape_cast %0 : vector<1x256x16xf32> to vector<256x16xf32>
    %c0_2 = arith.constant 0 : index
    %c0_3 = arith.constant 0 : index
    %2 = vector.load %arg2[%c0_2, %c0_3] : memref<16x8xf32, #tpu.memory_space<vmem>>, vector<16x8xf32>
    %cst = arith.constant dense<0.000000e+00> : vector<256x8xf32>
    %3 = tpu.matmul %1, %2, %cst {dimension_numbers = #tpu.dot_dimension_numbers<[1], [0], [0], [1], [0, 0, 1, 1], [], []>} : vector<256x16xf32>, vector<16x8xf32>, vector<256x8xf32> -> vector<256x8xf32>
    %c0_4 = arith.constant 0 : index
    %c0_5 = arith.constant 0 : index
    %4 = vector.load %arg3[%c0_4, %c0_5] : memref<1x8xf32, #tpu.memory_space<vmem>>, vector<1x8xf32>
    %5 = vector.broadcast %4 : vector<1x8xf32> to vector<256x8xf32>
    %6 = arith.addf %3, %5 : vector<256x8xf32>
    %cst_6 = arith.constant 0.000000e+00 : f32
    %7 = vector.broadcast %cst_6 : f32 to vector<256x8xf32>
    %8 = arith.maximumf %6, %7 : vector<256x8xf32>
    %cst_7 = arith.constant 0.000000e+00 : f32
    %9 = vector.broadcast %cst_7 : f32 to vector<4x10x10x8xf32>
    %c0_8 = arith.constant 0 : index
    %c0_9 = arith.constant 0 : index
    %c0_10 = arith.constant 0 : index
    %c0_11 = arith.constant 0 : index
    %10 = vector.load %arg11[%c0_8, %c0_9, %c0_10, %c0_11] : memref<4x10x10x8xf32, #tpu.memory_space<vmem>>, vector<4x10x10x8xf32>
    tpu.vector_store %arg11[%c0_8, %c0_9, %c0_10, %c0_11], %9 {strides = array<i32>} : memref<4x10x10x8xf32, #tpu.memory_space<vmem>>, vector<4x10x10x8xf32>,
    %11 = vector.extract_strided_slice %8 {offsets = [0, 0], sizes = [64, 8], strides = [1, 1]} : vector<256x8xf32> to vector<64x8xf32>
    %12 = vector.shape_cast %11 : vector<64x8xf32> to vector<8x8x8xf32>
    %c0_12 = arith.constant 0 : index
    %c1 = arith.constant 1 : index
    %c1_13 = arith.constant 1 : index
    %c0_14 = arith.constant 0 : index
    %13 = vector.load %arg11[%c0_12, %c1, %c1_13, %c0_14] : memref<4x10x10x8xf32, #tpu.memory_space<vmem>>, vector<1x8x8x8xf32>
    %14 = vector.shape_cast %13 : vector<1x8x8x8xf32> to vector<8x8x8xf32>
    %15 = vector.shape_cast %12 : vector<8x8x8xf32> to vector<1x8x8x8xf32>
    tpu.vector_store %arg11[%c0_12, %c1, %c1_13, %c0_14], %15 {strides = array<i32>} : memref<4x10x10x8xf32, #tpu.memory_space<vmem>>, vector<1x8x8x8xf32>,
    %16 = vector.extract_strided_slice %8 {offsets = [64, 0], sizes = [64, 8], strides = [1, 1]} : vector<256x8xf32> to vector<64x8xf32>
    %17 = vector.shape_cast %16 : vector<64x8xf32> to vector<8x8x8xf32>
    %c1_15 = arith.constant 1 : index
    %c1_16 = arith.constant 1 : index
    %c1_17 = arith.constant 1 : index
    %c0_18 = arith.constant 0 : index
    %18 = vector.load %arg11[%c1_15, %c1_16, %c1_17, %c0_18] : memref<4x10x10x8xf32, #tpu.memory_space<vmem>>, vector<1x8x8x8xf32>
    %19 = vector.shape_cast %18 : vector<1x8x8x8xf32> to vector<8x8x8xf32>
    %20 = vector.shape_cast %17 : vector<8x8x8xf32> to vector<1x8x8x8xf32>
    tpu.vector_store %arg11[%c1_15, %c1_16, %c1_17, %c0_18], %20 {strides = array<i32>} : memref<4x10x10x8xf32, #tpu.memory_space<vmem>>, vector<1x8x8x8xf32>,
    %21 = vector.extract_strided_slice %8 {offsets = [128, 0], sizes = [64, 8], strides = [1, 1]} : vector<256x8xf32> to vector<64x8xf32>
    %22 = vector.shape_cast %21 : vector<64x8xf32> to vector<8x8x8xf32>
    %c2 = arith.constant 2 : index
    %c1_19 = arith.constant 1 : index
    %c1_20 = arith.constant 1 : index
    %c0_21 = arith.constant 0 : index
    %23 = vector.load %arg11[%c2, %c1_19, %c1_20, %c0_21] : memref<4x10x10x8xf32, #tpu.memory_space<vmem>>, vector<1x8x8x8xf32>
    %24 = vector.shape_cast %23 : vector<1x8x8x8xf32> to vector<8x8x8xf32>
    %25 = vector.shape_cast %22 : vector<8x8x8xf32> to vector<1x8x8x8xf32>
    tpu.vector_store %arg11[%c2, %c1_19, %c1_20, %c0_21], %25 {strides = array<i32>} : memref<4x10x10x8xf32, #tpu.memory_space<vmem>>, vector<1x8x8x8xf32>,
    %26 = vector.extract_strided_slice %8 {offsets = [192, 0], sizes = [64, 8], strides = [1, 1]} : vector<256x8xf32> to vector<64x8xf32>
    %27 = vector.shape_cast %26 : vector<64x8xf32> to vector<8x8x8xf32>
    %c3 = arith.constant 3 : index
    %c1_22 = arith.constant 1 : index
    %c1_23 = arith.constant 1 : index
    %c0_24 = arith.constant 0 : index
    %28 = vector.load %arg11[%c3, %c1_22, %c1_23, %c0_24] : memref<4x10x10x8xf32, #tpu.memory_space<vmem>>, vector<1x8x8x8xf32>
    %29 = vector.shape_cast %28 : vector<1x8x8x8xf32> to vector<8x8x8xf32>
    %30 = vector.shape_cast %27 : vector<8x8x8xf32> to vector<1x8x8x8xf32>
    tpu.vector_store %arg11[%c3, %c1_22, %c1_23, %c0_24], %30 {strides = array<i32>} : memref<4x10x10x8xf32, #tpu.memory_space<vmem>>, vector<1x8x8x8xf32>,
    %cst_25 = arith.constant 0.000000e+00 : f32
    %31 = vector.broadcast %cst_25 : f32 to vector<64x8xf32>
    %c3_26 = arith.constant 3 : index
    %c0_27 = arith.constant 0 : index
    %c0_28 = arith.constant 0 : index
    %c0_29 = arith.constant 0 : index
    %32 = vector.load %arg11[%c3_26, %c0_27, %c0_28, %c0_29] : memref<4x10x10x8xf32, #tpu.memory_space<vmem>>, vector<1x8x8x8xf32>
    %33 = vector.shape_cast %32 : vector<1x8x8x8xf32> to vector<8x8x8xf32>
    %34 = vector.shape_cast %33 : vector<8x8x8xf32> to vector<64x8xf32>
    %c0_30 = arith.constant 0 : index
    %c0_31 = arith.constant 0 : index
    %c0_32 = arith.constant 0 : index
    %35 = vector.load %arg4[%c0_30, %c0_31, %c0_32] : memref<9x8x8xf32, #tpu.memory_space<vmem>>, vector<1x8x8xf32>
    %36 = vector.shape_cast %35 : vector<1x8x8xf32> to vector<8x8xf32>
    %cst_33 = arith.constant dense<0.000000e+00> : vector<64x8xf32>
    %37 = tpu.matmul %34, %36, %cst_33 {dimension_numbers = #tpu.dot_dimension_numbers<[1], [0], [0], [1], [0, 0, 1, 1], [], []>} : vector<64x8xf32>, vector<8x8xf32>, vector<64x8xf32> -> vector<64x8xf32>
    %38 = arith.addf %31, %37 : vector<64x8xf32>
    %c2_34 = arith.constant 2 : index
    %c0_35 = arith.constant 0 : index
    %c1_36 = arith.constant 1 : index
    %c0_37 = arith.constant 0 : index
    %39 = vector.load %arg11[%c2_34, %c0_35, %c1_36, %c0_37] : memref<4x10x10x8xf32, #tpu.memory_space<vmem>>, vector<1x8x8x8xf32>
    %40 = vector.shape_cast %39 : vector<1x8x8x8xf32> to vector<8x8x8xf32>
    %41 = vector.shape_cast %40 : vector<8x8x8xf32> to vector<64x8xf32>
    %c1_38 = arith.constant 1 : index
    %c0_39 = arith.constant 0 : index
    %c0_40 = arith.constant 0 : index
    %42 = vector.load %arg4[%c1_38, %c0_39, %c0_40] : memref<9x8x8xf32, #tpu.memory_space<vmem>>, vector<1x8x8xf32>
    %43 = vector.shape_cast %42 : vector<1x8x8xf32> to vector<8x8xf32>
    %cst_41 = arith.constant dense<0.000000e+00> : vector<64x8xf32>
    %44 = tpu.matmul %41, %43, %cst_41 {dimension_numbers = #tpu.dot_dimension_numbers<[1], [0], [0], [1], [0, 0, 1, 1], [], []>} : vector<64x8xf32>, vector<8x8xf32>, vector<64x8xf32> -> vector<64x8xf32>
    %45 = arith.addf %38, %44 : vector<64x8xf32>
    %c3_42 = arith.constant 3 : index
    %c0_43 = arith.constant 0 : index
    %c1_44 = arith.constant 1 : index
    %c0_45 = arith.constant 0 : index
    %46 = vector.load %arg11[%c3_42, %c0_43, %c1_44, %c0_45] : memref<4x10x10x8xf32, #tpu.memory_space<vmem>>, vector<1x8x8x8xf32>
    %47 = vector.shape_cast %46 : vector<1x8x8x8xf32> to vector<8x8x8xf32>
    %48 = vector.shape_cast %47 : vector<8x8x8xf32> to vector<64x8xf32>
    %c2_46 = arith.constant 2 : index
    %c0_47 = arith.constant 0 : index
    %c0_48 = arith.constant 0 : index
    %49 = vector.load %arg4[%c2_46, %c0_47, %c0_48] : memref<9x8x8xf32, #tpu.memory_space<vmem>>, vector<1x8x8xf32>
    %50 = vector.shape_cast %49 : vector<1x8x8xf32> to vector<8x8xf32>
    %cst_49 = arith.constant dense<0.000000e+00> : vector<64x8xf32>
    %51 = tpu.matmul %48, %50, %cst_49 {dimension_numbers = #tpu.dot_dimension_numbers<[1], [0], [0], [1], [0, 0, 1, 1], [], []>} : vector<64x8xf32>, vector<8x8xf32>, vector<64x8xf32> -> vector<64x8xf32>
    %52 = arith.addf %45, %51 : vector<64x8xf32>
    %c1_50 = arith.constant 1 : index
    %c1_51 = arith.constant 1 : index
    %c0_52 = arith.constant 0 : index
    %c0_53 = arith.constant 0 : index
    %53 = vector.load %arg11[%c1_50, %c1_51, %c0_52, %c0_53] : memref<4x10x10x8xf32, #tpu.memory_space<vmem>>, vector<1x8x8x8xf32>
    %54 = vector.shape_cast %53 : vector<1x8x8x8xf32> to vector<8x8x8xf32>
    %55 = vector.shape_cast %54 : vector<8x8x8xf32> to vector<64x8xf32>
    %c3_54 = arith.constant 3 : index
    %c0_55 = arith.constant 0 : index
    %c0_56 = arith.constant 0 : index
    %56 = vector.load %arg4[%c3_54, %c0_55, %c0_56] : memref<9x8x8xf32, #tpu.memory_space<vmem>>, vector<1x8x8xf32>
    %57 = vector.shape_cast %56 : vector<1x8x8xf32> to vector<8x8xf32>
    %cst_57 = arith.constant dense<0.000000e+00> : vector<64x8xf32>
    %58 = tpu.matmul %55, %57, %cst_57 {dimension_numbers = #tpu.dot_dimension_numbers<[1], [0], [0], [1], [0, 0, 1, 1], [], []>} : vector<64x8xf32>, vector<8x8xf32>, vector<64x8xf32> -> vector<64x8xf32>
    %59 = arith.addf %52, %58 : vector<64x8xf32>
    %c0_58 = arith.constant 0 : index
    %c1_59 = arith.constant 1 : index
    %c1_60 = arith.constant 1 : index
    %c0_61 = arith.constant 0 : index
    %60 = vector.load %arg11[%c0_58, %c1_59, %c1_60, %c0_61] : memref<4x10x10x8xf32, #tpu.memory_space<vmem>>, vector<1x8x8x8xf32>
    %61 = vector.shape_cast %60 : vector<1x8x8x8xf32> to vector<8x8x8xf32>
    %62 = vector.shape_cast %61 : vector<8x8x8xf32> to vector<64x8xf32>
    %c4 = arith.constant 4 : index
    %c0_62 = arith.constant 0 : index
    %c0_63 = arith.constant 0 : index
    %63 = vector.load %arg4[%c4, %c0_62, %c0_63] : memref<9x8x8xf32, #tpu.memory_space<vmem>>, vector<1x8x8xf32>
    %64 = vector.shape_cast %63 : vector<1x8x8xf32> to vector<8x8xf32>
    %cst_64 = arith.constant dense<0.000000e+00> : vector<64x8xf32>
    %65 = tpu.matmul %62, %64, %cst_64 {dimension_numbers = #tpu.dot_dimension_numbers<[1], [0], [0], [1], [0, 0, 1, 1], [], []>} : vector<64x8xf32>, vector<8x8xf32>, vector<64x8xf32> -> vector<64x8xf32>
    %66 = arith.addf %59, %65 : vector<64x8xf32>
    %c1_65 = arith.constant 1 : index
    %c1_66 = arith.constant 1 : index
    %c1_67 = arith.constant 1 : index
    %c0_68 = arith.constant 0 : index
    %67 = vector.load %arg11[%c1_65, %c1_66, %c1_67, %c0_68] : memref<4x10x10x8xf32, #tpu.memory_space<vmem>>, vector<1x8x8x8xf32>
    %68 = vector.shape_cast %67 : vector<1x8x8x8xf32> to vector<8x8x8xf32>
    %69 = vector.shape_cast %68 : vector<8x8x8xf32> to vector<64x8xf32>
    %c5 = arith.constant 5 : index
    %c0_69 = arith.constant 0 : index
    %c0_70 = arith.constant 0 : index
    %70 = vector.load %arg4[%c5, %c0_69, %c0_70] : memref<9x8x8xf32, #tpu.memory_space<vmem>>, vector<1x8x8xf32>
    %71 = vector.shape_cast %70 : vector<1x8x8xf32> to vector<8x8xf32>
    %cst_71 = arith.constant dense<0.000000e+00> : vector<64x8xf32>
    %72 = tpu.matmul %69, %71, %cst_71 {dimension_numbers = #tpu.dot_dimension_numbers<[1], [0], [0], [1], [0, 0, 1, 1], [], []>} : vector<64x8xf32>, vector<8x8xf32>, vector<64x8xf32> -> vector<64x8xf32>
    %73 = arith.addf %66, %72 : vector<64x8xf32>
    %c3_72 = arith.constant 3 : index
    %c1_73 = arith.constant 1 : index
    %c0_74 = arith.constant 0 : index
    %c0_75 = arith.constant 0 : index
    %74 = vector.load %arg11[%c3_72, %c1_73, %c0_74, %c0_75] : memref<4x10x10x8xf32, #tpu.memory_space<vmem>>, vector<1x8x8x8xf32>
    %75 = vector.shape_cast %74 : vector<1x8x8x8xf32> to vector<8x8x8xf32>
    %76 = vector.shape_cast %75 : vector<8x8x8xf32> to vector<64x8xf32>
    %c6 = arith.constant 6 : index
    %c0_76 = arith.constant 0 : index
    %c0_77 = arith.constant 0 : index
    %77 = vector.load %arg4[%c6, %c0_76, %c0_77] : memref<9x8x8xf32, #tpu.memory_space<vmem>>, vector<1x8x8xf32>
    %78 = vector.shape_cast %77 : vector<1x8x8xf32> to vector<8x8xf32>
    %cst_78 = arith.constant dense<0.000000e+00> : vector<64x8xf32>
    %79 = tpu.matmul %76, %78, %cst_78 {dimension_numbers = #tpu.dot_dimension_numbers<[1], [0], [0], [1], [0, 0, 1, 1], [], []>} : vector<64x8xf32>, vector<8x8xf32>, vector<64x8xf32> -> vector<64x8xf32>
    %80 = arith.addf %73, %79 : vector<64x8xf32>
    %c2_79 = arith.constant 2 : index
    %c1_80 = arith.constant 1 : index
    %c1_81 = arith.constant 1 : index
    %c0_82 = arith.constant 0 : index
    %81 = vector.load %arg11[%c2_79, %c1_80, %c1_81, %c0_82] : memref<4x10x10x8xf32, #tpu.memory_space<vmem>>, vector<1x8x8x8xf32>
    %82 = vector.shape_cast %81 : vector<1x8x8x8xf32> to vector<8x8x8xf32>
    %83 = vector.shape_cast %82 : vector<8x8x8xf32> to vector<64x8xf32>
    %c7 = arith.constant 7 : index
    %c0_83 = arith.constant 0 : index
    %c0_84 = arith.constant 0 : index
    %84 = vector.load %arg4[%c7, %c0_83, %c0_84] : memref<9x8x8xf32, #tpu.memory_space<vmem>>, vector<1x8x8xf32>
    %85 = vector.shape_cast %84 : vector<1x8x8xf32> to vector<8x8xf32>
    %cst_85 = arith.constant dense<0.000000e+00> : vector<64x8xf32>
    %86 = tpu.matmul %83, %85, %cst_85 {dimension_numbers = #tpu.dot_dimension_numbers<[1], [0], [0], [1], [0, 0, 1, 1], [], []>} : vector<64x8xf32>, vector<8x8xf32>, vector<64x8xf32> -> vector<64x8xf32>
    %87 = arith.addf %80, %86 : vector<64x8xf32>
    %c3_86 = arith.constant 3 : index
    %c1_87 = arith.constant 1 : index
    %c1_88 = arith.constant 1 : index
    %c0_89 = arith.constant 0 : index
    %88 = vector.load %arg11[%c3_86, %c1_87, %c1_88, %c0_89] : memref<4x10x10x8xf32, #tpu.memory_space<vmem>>, vector<1x8x8x8xf32>
    %89 = vector.shape_cast %88 : vector<1x8x8x8xf32> to vector<8x8x8xf32>
    %90 = vector.shape_cast %89 : vector<8x8x8xf32> to vector<64x8xf32>
    %c8 = arith.constant 8 : index
    %c0_90 = arith.constant 0 : index
    %c0_91 = arith.constant 0 : index
    %91 = vector.load %arg4[%c8, %c0_90, %c0_91] : memref<9x8x8xf32, #tpu.memory_space<vmem>>, vector<1x8x8xf32>
    %92 = vector.shape_cast %91 : vector<1x8x8xf32> to vector<8x8xf32>
    %cst_92 = arith.constant dense<0.000000e+00> : vector<64x8xf32>
    %93 = tpu.matmul %90, %92, %cst_92 {dimension_numbers = #tpu.dot_dimension_numbers<[1], [0], [0], [1], [0, 0, 1, 1], [], []>} : vector<64x8xf32>, vector<8x8xf32>, vector<64x8xf32> -> vector<64x8xf32>
    %94 = arith.addf %87, %93 : vector<64x8xf32>
    %c0_93 = arith.constant 0 : index
    %c0_94 = arith.constant 0 : index
    %95 = vector.load %arg5[%c0_93, %c0_94] : memref<1x8xf32, #tpu.memory_space<vmem>>, vector<1x8xf32>
    %96 = vector.broadcast %95 : vector<1x8xf32> to vector<64x8xf32>
    %97 = arith.addf %94, %96 : vector<64x8xf32>
    %cst_95 = arith.constant 0.000000e+00 : f32
    %98 = vector.broadcast %cst_95 : f32 to vector<64x8xf32>
    %99 = arith.maximumf %97, %98 : vector<64x8xf32>
    %c0_96 = arith.constant 0 : index
    %c0_97 = arith.constant 0 : index
    %100 = vector.load %arg6[%c0_96, %c0_97] : memref<8x32xf32, #tpu.memory_space<vmem>>, vector<8x32xf32>
    %cst_98 = arith.constant dense<0.000000e+00> : vector<64x32xf32>
    %101 = tpu.matmul %99, %100, %cst_98 {dimension_numbers = #tpu.dot_dimension_numbers<[1], [0], [0], [1], [0, 0, 1, 1], [], []>} : vector<64x8xf32>, vector<8x32xf32>, vector<64x32xf32> -> vector<64x32xf32>
    %c0_99 = arith.constant 0 : index
    %c0_100 = arith.constant 0 : index
    %102 = vector.load %arg7[%c0_99, %c0_100] : memref<1x32xf32, #tpu.memory_space<vmem>>, vector<1x32xf32>
    %103 = vector.broadcast %102 : vector<1x32xf32> to vector<64x32xf32>
    %104 = arith.addf %101, %103 : vector<64x32xf32>
    %105 = vector.extract_strided_slice %1 {offsets = [0, 0], sizes = [64, 16], strides = [1, 1]} : vector<256x16xf32> to vector<64x16xf32>
    %c0_101 = arith.constant 0 : index
    %c0_102 = arith.constant 0 : index
    %106 = vector.load %arg8[%c0_101, %c0_102] : memref<16x32xf32, #tpu.memory_space<vmem>>, vector<16x32xf32>
    %cst_103 = arith.constant dense<0.000000e+00> : vector<64x32xf32>
    %107 = tpu.matmul %105, %106, %cst_103 {dimension_numbers = #tpu.dot_dimension_numbers<[1], [0], [0], [1], [0, 0, 1, 1], [], []>} : vector<64x16xf32>, vector<16x32xf32>, vector<64x32xf32> -> vector<64x32xf32>
    %c0_104 = arith.constant 0 : index
    %c0_105 = arith.constant 0 : index
    %108 = vector.load %arg9[%c0_104, %c0_105] : memref<1x32xf32, #tpu.memory_space<vmem>>, vector<1x32xf32>
    %109 = vector.broadcast %108 : vector<1x32xf32> to vector<64x32xf32>
    %110 = arith.addf %107, %109 : vector<64x32xf32>
    %111 = arith.addf %104, %110 : vector<64x32xf32>
    %cst_106 = arith.constant 0.000000e+00 : f32
    %112 = vector.broadcast %cst_106 : f32 to vector<64x32xf32>
    %113 = arith.maximumf %111, %112 : vector<64x32xf32>
    %c0_107 = arith.constant 0 : index
    %c0_108 = arith.constant 0 : index
    %c0_109 = arith.constant 0 : index
    %114 = vector.load %arg10[%c0_107, %c0_108, %c0_109] : memref<1x64x32xf32, #tpu.memory_space<vmem>>, vector<1x64x32xf32>
    %115 = vector.shape_cast %114 : vector<1x64x32xf32> to vector<64x32xf32>
    %116 = vector.shape_cast %113 : vector<64x32xf32> to vector<1x64x32xf32>
    tpu.vector_store %arg10[%c0_107, %c0_108, %c0_109], %116 {strides = array<i32>} : memref<1x64x32xf32, #tpu.memory_space<vmem>>, vector<1x64x32xf32>,
    return
  }
  func.func @transform_0(%arg0: i32) -> (i32, i32, i32) {
    %c0_i32 = arith.constant 0 : i32
    %c0_i32_0 = arith.constant 0 : i32
    %c0_i32_1 = arith.constant 0 : i32
    return %arg0, %c0_i32, %c0_i32_0 : i32, i32, i32
  }
  func.func @transform_1(%arg0: i32) -> (i32, i32) {
    %c0_i32 = arith.constant 0 : i32
    %c0_i32_0 = arith.constant 0 : i32
    %c0_i32_1 = arith.constant 0 : i32
    return %c0_i32, %c0_i32_0 : i32, i32
  }
  func.func @transform_2(%arg0: i32) -> (i32, i32) {
    %c0_i32 = arith.constant 0 : i32
    %c0_i32_0 = arith.constant 0 : i32
    %c0_i32_1 = arith.constant 0 : i32
    return %c0_i32, %c0_i32_0 : i32, i32
  }
  func.func @transform_3(%arg0: i32) -> (i32, i32, i32) {
    %c0_i32 = arith.constant 0 : i32
    %c0_i32_0 = arith.constant 0 : i32
    %c0_i32_1 = arith.constant 0 : i32
    %c0_i32_2 = arith.constant 0 : i32
    return %c0_i32, %c0_i32_0, %c0_i32_1 : i32, i32, i32
  }
  func.func @transform_4(%arg0: i32) -> (i32, i32) {
    %c0_i32 = arith.constant 0 : i32
    %c0_i32_0 = arith.constant 0 : i32
    %c0_i32_1 = arith.constant 0 : i32
    return %c0_i32, %c0_i32_0 : i32, i32
  }
  func.func @transform_5(%arg0: i32) -> (i32, i32) {
    %c0_i32 = arith.constant 0 : i32
    %c0_i32_0 = arith.constant 0 : i32
    %c0_i32_1 = arith.constant 0 : i32
    return %c0_i32, %c0_i32_0 : i32, i32
  }
  func.func @transform_6(%arg0: i32) -> (i32, i32) {
    %c0_i32 = arith.constant 0 : i32
    %c0_i32_0 = arith.constant 0 : i32
    %c0_i32_1 = arith.constant 0 : i32
    return %c0_i32, %c0_i32_0 : i32, i32
  }
  func.func @transform_7(%arg0: i32) -> (i32, i32) {
    %c0_i32 = arith.constant 0 : i32
    %c0_i32_0 = arith.constant 0 : i32
    %c0_i32_1 = arith.constant 0 : i32
    return %c0_i32, %c0_i32_0 : i32, i32
  }
  func.func @transform_8(%arg0: i32) -> (i32, i32) {
    %c0_i32 = arith.constant 0 : i32
    %c0_i32_0 = arith.constant 0 : i32
    %c0_i32_1 = arith.constant 0 : i32
    return %c0_i32, %c0_i32_0 : i32, i32
  }
  func.func @transform_9(%arg0: i32) -> (i32, i32, i32) {
    %c0_i32 = arith.constant 0 : i32
    %c0_i32_0 = arith.constant 0 : i32
    %c0_i32_1 = arith.constant 0 : i32
    return %arg0, %c0_i32, %c0_i32_0 : i32, i32, i32
  }
}

</mosaic_0001>

<bundles_post_ra>
// kernel: bottleneck_forward.1
= control target key start
LH: loop header
LB: loop body
LE: loop exit
PB: predicated region body
PF: predicated region fallthrough
CT: control target
= control target key end

     0   :  { %14 = vsyncpa [#allocation4], 0  ;;  %s3924_s0 = inlined_call_operand.vmem [shape: f32[2,256,16], index: 0, kind: input, shape index: {}]   ;;  %s3925_s1 = inlined_call_operand.vmem [shape: f32[16,8], index: 1, kind: input, shape index: {}]   ;;  %s3926_s2 = inlined_call_operand.vmem [shape: f32[1,8], index: 2, kind: input, shape index: {}]   ;;  %s3927_s3 = inlined_call_operand.vmem [shape: f32[9,8,8], index: 3, kind: input, shape index: {}]   ;;  %s3928_s4 = inlined_call_operand.vmem [shape: f32[1,8], index: 4, kind: input, shape index: {}]   ;;  %s3929_s5 = inlined_call_operand.vmem [shape: f32[8,32], index: 5, kind: input, shape index: {}]   ;;  %s3930_s6 = inlined_call_operand.vmem [shape: f32[1,32], index: 6, kind: input, shape index: {}]   ;;  %s3931_s7 = inlined_call_operand.vmem [shape: f32[16,32], index: 7, kind: input, shape index: {}]   ;;  %s3932_s8 = inlined_call_operand.vmem [shape: f32[1,32], index: 8, kind: input, shape index: {}]   ;;  %s3933_s9 = inlined_call_operand.hbm [shape: f32[2,64,32], index: 9, kind: output, shape index: {}]  }
   0x1   :  { %16 = vsyncpa [#allocation4 + $0x1], 0  ;;  %s3273_s30 = smov 0   ;;  %s3275_s10 = smov 0  }
   0x2   :  { %s3277_s11 = smov 0   ;;  %s3279_s12 = smov 0  }
   0x3 LB: > { %s3294_s13 = sadd.s32 4294967295, %s3217_s12   ;;  %s2527_s14 = sadd.s32 4294967294, %s3217_s12   ;;  %s3217_s12 = sphi %s3279_s12, %s3939_s12   ;;  %s3213_s11 = sphi %s3277_s11, %s3938_s11   ;;  %s3209_s10 = sphi %s3275_s10, %s3937_s10   ;;  %s3205_s30 = sphi %s3273_s30, %s3936_s30  }
   0x4   : > { %s3298_s15 = sadd.s32 1, %s3217_s12   ;;  %s223_s16 = sadd.s32 1, %s3213_s11 }
   0x5   : > { %s220_s17 = ssub.s32 %s3217_s12, %s3298_s15  ;;  %p233_p0 = scmp.ne.s32.totalorder %s3213_s11, %s3209_s10 }
   0x6   : > { %p221_p1 = scmp.eq.s32.totalorder %s220_s17, 0  ;;  %p234_p2 = scmp.eq.s32.totalorder %s3294_s13, 1 }
   0x7   : > { %p239_p3 = scmp.ne.s32.totalorder %s3209_s10, %s3205_s30  ;;  %p240_p4 = scmp.eq.s32.totalorder %s2527_s14, 1 }
   0x8   : > { %s3309_s18 = scalar_select %p221_p1, %s3213_s11, %s223_s16  }
   0x9   : > { %p3311_p5 = por %p234_p2, %p233_p0  ;;  %p3315_p6 = por %p240_p4, %p239_p3 }
   0xa   : > { %p2530_p7 = scmp.ge.s32.totalorder %s3217_s12, 1  ;;  %p290_p8 = scmp.lt.s32.totalorder %s3217_s12, 3 }
   0xc   : > { %p291_p9 = pnand %p2530_p7, %p290_p8 }
   0xd   : > { %v363_v0 = vld [vmem:[%s3925_s1] sm:$0xff] (!%p291_p9)  ;;  %v364_v1 = vld [vmem:[%s3925_s1 + $0x8] sm:$0xff] (!%p291_p9)  ;;  %p326_p10 = scmp.lt.s32.totalorder (!%p291_p9), %s3294_s13, 1  ;;  %vm372_vm0 = vcmask (!%p291_p9), 130048   ;;  %vm726_vm1 = vcmask (!%p291_p9), 64512   ;;  %vm728_vm2 = vcmask (!%p291_p9), 58368  }
   0xe   : > { %294 = sbr.rel (%p291_p9) target bundleno = 892 (0x37c), region = 56  ;;  %v3015_v2 = vpack.c.bf16 (!%p291_p9), %v364_v1, %v363_v0  ;;  %v3219_v35 = vmov (!%p291_p9), 0.0   ;;  %v2567_v36 = vld [vmem:[%s3927_s3 + $0x8] sm:$0xff] (!%p291_p9)  ;;  %v3565_v38 = vld [vmem:[%s3927_s3] sm:$0xff] (!%p291_p9)  ;;  %v3573_v39 = vld [vmem:[%s3927_s3 + $0x10] sm:$0xff] (!%p291_p9)  ;;  %s323_s22 = sand.u32 (!%p291_p9), 1, %s3209_s10  }
   0xf   : > { %732 = vst.msk [vmem:[#allocation2 + $0x20] sm:$0xff] (!%p291_p9), %vm726_vm1, %v3219_v35  ;;  %730 = vst.msk [vmem:[#allocation2 + $0x10] sm:$0xff] (!%p291_p9), %vm726_vm1, %v3219_v35  ;;  %3023 = vmatprep.subr.mxu1 (!%p291_p9), %v3565_v38  ;;  %v3579_v40 = vld [vmem:[%s3926_s2] ss:$0 sm:$0xff] (!%p291_p9)  ;;  %s2531_s27 = sshll.u32 (!%p291_p9), %s323_s22, 6  ;;  %vm2442_vm3 = vcmask (!%p291_p9), 261120  }
  0x10   : > { %3016 = vmatprep.subr.bf16.mxu0 (!%p291_p9), %v3015_v2  ;;  %733 = vst.msk [vmem:[#allocation2 + $0x28] sm:$0x3] (!%p291_p9), %vm728_vm2, %v3219_v35  ;;  %731 = vst.msk [vmem:[#allocation2 + $0x18] sm:$0x3] (!%p291_p9), %vm728_vm2, %v3219_v35  ;;  %3024 = vmatpush3.msra.mxu1 (!%p291_p9), %v3565_v38  ;;  %s325_s28 = scalar_lea.vmem (!%p291_p9), [#allocation3], %s2531_s27  ;;  %s3220_s24 = smov (!%p291_p9), [#allocation3]  }
  0x11   : > { %3018 = vmatpush3.bf16.msra.mxu0 (!%p291_p9), %v3015_v2  ;;  %734 = vst.msk [vmem:[#allocation2 + $0x30] sm:$0xff] (!%p291_p9), %vm726_vm1, %v3219_v35  ;;  %736 = vst.msk [vmem:[#allocation2 + $0x40] sm:$0xff] (!%p291_p9), %vm726_vm1, %v3219_v35  ;;  %2887 = vmatprep.subr.mxu1 (!%p291_p9), %v3573_v39  ;;  %s2465_s14 = sshll.u32 (!%p291_p9), %s325_s28, 4  ;;  %s3877_s14 = int_to_ptr.vmem [resolvable:$true] %s2465_s14 }
  0x12   : > { %735 = vst.msk [vmem:[#allocation2 + $0x38] sm:$0x3] (!%p291_p9), %vm728_vm2, %v3219_v35  ;;  %737 = vst.msk [vmem:[#allocation2 + $0x48] sm:$0x3] (!%p291_p9), %vm728_vm2, %v3219_v35  ;;  %2859 = vmatprep.subr.mxu0 (!%p291_p9), %v2567_v36  ;;  %s3155_s23 = scalar_lea.vmem (!%p291_p9), %s3877_s14, 1024 }
  0x13   : > { %738 = vst.msk [vmem:[#allocation2 + $0x50] sm:$0xff] (!%p291_p9), %vm726_vm1, %v3219_v35  ;;  %740 = vst.msk [vmem:[#allocation2 + $0x60] sm:$0xff] (!%p291_p9), %vm726_vm1, %v3219_v35  ;;  %p3156_p11 = scmp.ne.s32.totalorder (!%p291_p9), %s3877_s14, %s3155_s23 }
  0x14   : > { %739 = vst.msk [vmem:[#allocation2 + $0x58] sm:$0x3] (!%p291_p9), %vm728_vm2, %v3219_v35  ;;  %741 = vst.msk [vmem:[#allocation2 + $0x68] sm:$0x3] (!%p291_p9), %vm728_vm2, %v3219_v35 }
  0x15   : > { %s327_s25 = scalar_select %p326_p10, %s3294_s13, 1  ;;  %742 = vst.msk [vmem:[#allocation2 + $0x70] sm:$0xff] %vm726_vm1, %v3219_v35  ;;  %744 = vst.msk [vmem:[#allocation2 + $0x80] sm:$0xff] %vm726_vm1, %v3219_v35 }
  0x16   : > { %743 = vst.msk [vmem:[#allocation2 + $0x78] sm:$0x3] %vm728_vm2, %v3219_v35  ;;  %745 = vst.msk [vmem:[#allocation2 + $0x88] sm:$0x3] %vm728_vm2, %v3219_v35  ;;  %p3157_p12 = pnand %p3156_p11, %p3311_p5 }
  0x17   : > { %s2671_s26 = sshll.u32 %s327_s25, 8  ;;  %750 = vst.msk [vmem:[#allocation2 + $0xb0] sm:$0xff] %vm726_vm1, %v3219_v35  ;;  %752 = vst.msk [vmem:[#allocation2 + $0xc0] sm:$0xff] %vm726_vm1, %v3219_v35  ;;  %s3159_s25 = sshll.u32 %s3220_s24, 4  ;;  %s3160_s25 = int_to_ptr.vmem [resolvable:$false] %s3159_s25 }
  0x18   : > { %s3332_s29 = scalar_lea.vmem %s3924_s0, %s2671_s26  ;;  %751 = vst.msk [vmem:[#allocation2 + $0xb8] sm:$0x3] %vm728_vm2, %v3219_v35  ;;  %753 = vst.msk [vmem:[#allocation2 + $0xc8] sm:$0x3] %vm728_vm2, %v3219_v35  ;;  %p3158_p13 = pneg %p3157_p12 }
  0x19   : > { %v3335_v3 = vld [vmem:[%s3332_s29] sm:$0xff]  ;;  %v3338_v4 = vld [vmem:[%s3332_s29 + $0x8] sm:$0xff]  ;;  %v3341_v5 = vld [vmem:[%s3332_s29 + $0x10] sm:$0xff]  ;;  %754 = vst.msk [vmem:[#allocation2 + $0xd0] sm:$0xff] %vm726_vm1, %v3219_v35  ;;  %s3161_s26 = scalar_lea.vmem %s3160_s25, 2048  ;;  %p3162_p0 = scmp.lt.s32.totalorder %s3877_s14, %s3160_s25 }
  0x1a   : > { %2811 = vmatprep.mubr.msk.f32.mxu0 %vm372_vm0, %v3335_v3  ;;  %v3350_v6 = vld [vmem:[%s3332_s29 + $0x18] sm:$0xff]  ;;  %v3353_v7 = vld [vmem:[%s3332_s29 + $0x20] sm:$0xff]  ;;  %v3360_v8 = vld [vmem:[%s3332_s29 + $0x28] sm:$0xff]  ;;  %755 = vst.msk [vmem:[#allocation2 + $0xd8] sm:$0x3] %vm728_vm2, %v3219_v35  ;;  %p3163_p1 = scmp.lt.s32.totalorder %s3161_s26, %s3155_s23 }
  0x1b   : > { %2812 = vmatmul.mubr.msk.f32.vlgmr.msra.gmra.mrb[0].mxu0 %vm372_vm0, %v3338_v4  ;;  %v3363_v9 = vld [vmem:[%s3332_s29 + $0x30] sm:$0xff]  ;;  %v3370_v10 = vld [vmem:[%s3332_s29 + $0x38] sm:$0xff]  ;;  %v339_v11 = vld [vmem:[%s3332_s29 + $0x40] sm:$0xff]  ;;  %756 = vst.msk [vmem:[#allocation2 + $0xe0] sm:$0xff] %vm726_vm1, %v3219_v35 }
  0x1c   : > { %2814 = vmatprep.mubr.msk.f32.mxu0 %vm372_vm0, %v3341_v5  ;;  %v340_v12 = vld [vmem:[%s3332_s29 + $0x48] sm:$0xff]  ;;  %v341_v13 = vld [vmem:[%s3332_s29 + $0x50] sm:$0xff]  ;;  %v342_v14 = vld [vmem:[%s3332_s29 + $0x58] sm:$0xff]  ;;  %757 = vst.msk [vmem:[#allocation2 + $0xe8] sm:$0x3] %vm728_vm2, %v3219_v35  ;;  %2860 = vmatpush3.msra.mxu0 %v2567_v36  ;;  %p3164_p2 = por %p3163_p1, %p3162_p0 }
  0x1d   : > { %v343_v15 = vld [vmem:[%s3332_s29 + $0x60] sm:$0xff]  ;;  %v344_v16 = vld [vmem:[%s3332_s29 + $0x68] sm:$0xff]  ;;  %v345_v17 = vld [vmem:[%s3332_s29 + $0x70] sm:$0xff]  ;;  %758 = vst.msk [vmem:[#allocation2 + $0xf0] sm:$0xff] %vm726_vm1, %v3219_v35  ;;  %2873 = vmatprep.subr.mxu0 %v3565_v38 }
  0x1e   : > { %v346_v18 = vld [vmem:[%s3332_s29 + $0x78] sm:$0xff]  ;;  %v347_v19 = vld [vmem:[%s3332_s29 + $0x80] sm:$0xff]  ;;  %v348_v20 = vld [vmem:[%s3332_s29 + $0x88] sm:$0xff]  ;;  %759 = vst.msk [vmem:[#allocation2 + $0xf8] sm:$0x3] %vm728_vm2, %v3219_v35  ;;  %p3165_p3 = pnand %p3164_p2, %p3158_p13 }
  0x1f   : > { %2815 = vmatmul.mubr.msk.f32.gmra.mrb[2].mxu0 %vm372_vm0, %v3350_v6  ;;  %v349_v21 = vld [vmem:[%s3332_s29 + $0x90] sm:$0xff]  ;;  %v350_v22 = vld [vmem:[%s3332_s29 + $0x98] sm:$0xff]  ;;  %v351_v23 = vld [vmem:[%s3332_s29 + $0xa0] sm:$0xff]  ;;  %760 = vst.msk [vmem:[#allocation2 + $0x100] sm:$0xff] %vm726_vm1, %v3219_v35 }
  0x20   : > { %2817 = vmatprep.mubr.msk.f32.mxu0 %vm372_vm0, %v3353_v7  ;;  %v352_v24 = vld [vmem:[%s3332_s29 + $0xa8] sm:$0xff]  ;;  %v353_v25 = vld [vmem:[%s3332_s29 + $0xb0] sm:$0xff]  ;;  %v354_v26 = vld [vmem:[%s3332_s29 + $0xb8] sm:$0xff]  ;;  %761 = vst.msk [vmem:[#allocation2 + $0x108] sm:$0x3] %vm728_vm2, %v3219_v35 }
  0x21   : > { %v355_v27 = vld [vmem:[%s3332_s29 + $0xc0] sm:$0xff]  ;;  %v356_v28 = vld [vmem:[%s3332_s29 + $0xc8] sm:$0xff]  ;;  %v357_v29 = vld [vmem:[%s3332_s29 + $0xd0] sm:$0xff]  ;;  %762 = vst.msk [vmem:[#allocation2 + $0x110] sm:$0xff] %vm726_vm1, %v3219_v35 }
  0x22   : > { %v358_v30 = vld [vmem:[%s3332_s29 + $0xd8] sm:$0xff]  ;;  %v359_v31 = vld [vmem:[%s3332_s29 + $0xe0] sm:$0xff]  ;;  %v360_v32 = vld [vmem:[%s3332_s29 + $0xe8] sm:$0xff]  ;;  %763 = vst.msk [vmem:[#allocation2 + $0x118] sm:$0x3] %vm728_vm2, %v3219_v35 }
  0x23   : > { %2818 = vmatmul.mubr.msk.f32.gmra.mrb[4].mxu0 %vm372_vm0, %v3360_v8  ;;  %v361_v33 = vld [vmem:[%s3332_s29 + $0xf0] sm:$0xff]  ;;  %v362_v34 = vld [vmem:[%s3332_s29 + $0xf8] sm:$0xff]  ;;  %764 = vst.msk [vmem:[#allocation2 + $0x120] sm:$0xff] %vm726_vm1, %v3219_v35  ;;  %768 = vst.msk [vmem:[#allocation2 + $0x140] sm:$0xff] %vm726_vm1, %v3219_v35  ;;  %s2672_s29 = sshll.u32 %s3294_s13, 10  ;;  %s3883_s13 = scalar_lea.sflag [#allocation4], %s323_s22 }
  0x24   : > { %2820 = vmatprep.mubr.msk.f32.mxu0 %vm372_vm0, %v3363_v9  ;;  %765 = vst.msk [vmem:[#allocation2 + $0x128] sm:$0x3] %vm728_vm2, %v3219_v35  ;;  %769 = vst.msk [vmem:[#allocation2 + $0x148] sm:$0x3] %vm728_vm2, %v3219_v35  ;;  %s3875_s21 = scalar_lea.hbm %s3933_s9, %s2672_s29 }
  0x25   : > { %770 = vst.msk [vmem:[#allocation2 + $0x150] sm:$0xff] %vm726_vm1, %v3219_v35  ;;  %772 = vst.msk [vmem:[#allocation2 + $0x160] sm:$0xff] %vm726_vm1, %v3219_v35 }
  0x26   : > { %771 = vst.msk [vmem:[#allocation2 + $0x158] sm:$0x3] %vm728_vm2, %v3219_v35  ;;  %773 = vst.msk [vmem:[#allocation2 + $0x168] sm:$0x3] %vm728_vm2, %v3219_v35 }
  0x27   : > { %2821 = vmatmul.mubr.msk.f32.gmra.mrb[6].mxu0 %vm372_vm0, %v3370_v10  ;;  %774 = vst.msk [vmem:[#allocation2 + $0x170] sm:$0xff] %vm726_vm1, %v3219_v35  ;;  %776 = vst.msk [vmem:[#allocation2 + $0x180] sm:$0xff] %vm726_vm1, %v3219_v35 }
  0x28   : > { %2823 = vmatprep.mubr.msk.f32.mxu0 %vm372_vm0, %v339_v11  ;;  %775 = vst.msk [vmem:[#allocation2 + $0x178] sm:$0x3] %vm728_vm2, %v3219_v35  ;;  %777 = vst.msk [vmem:[#allocation2 + $0x188] sm:$0x3] %vm728_vm2, %v3219_v35 }
  0x29   : > { %778 = vst.msk [vmem:[#allocation2 + $0x190] sm:$0xff] %vm726_vm1, %v3219_v35  ;;  %780 = vst.msk [vmem:[#allocation2 + $0x1a0] sm:$0xff] %vm726_vm1, %v3219_v35 }
  0x2a   : > { %779 = vst.msk [vmem:[#allocation2 + $0x198] sm:$0x3] %vm728_vm2, %v3219_v35  ;;  %781 = vst.msk [vmem:[#allocation2 + $0x1a8] sm:$0x3] %vm728_vm2, %v3219_v35 }
  0x2b   : > { %2824 = vmatmul.mubr.msk.f32.gmra.mrb[8].mxu0 %vm372_vm0, %v340_v12  ;;  %782 = vst.msk [vmem:[#allocation2 + $0x1b0] sm:$0xff] %vm726_vm1, %v3219_v35  ;;  %784 = vst.msk [vmem:[#allocation2 + $0x1c0] sm:$0xff] %vm726_vm1, %v3219_v35  ;;  %v855_v37 = vld [vmem:[#allocation2 + $0x141] sm:$0xff] }
  0x2c   : > { %2826 = vmatprep.mubr.msk.f32.mxu0 %vm372_vm0, %v341_v13  ;;  %783 = vst.msk [vmem:[#allocation2 + $0x1b8] sm:$0x3] %vm728_vm2, %v3219_v35  ;;  %785 = vst.msk [vmem:[#allocation2 + $0x1c8] sm:$0x3] %vm728_vm2, %v3219_v35 }
  0x2d   : > { %788 = vst.msk [vmem:[#allocation2 + $0x1e0] sm:$0xff] %vm726_vm1, %v3219_v35  ;;  %790 = vst.msk [vmem:[#allocation2 + $0x1f0] sm:$0xff] %vm726_vm1, %v3219_v35 }
  0x2e   : > { %789 = vst.msk [vmem:[#allocation2 + $0x1e8] sm:$0x3] %vm728_vm2, %v3219_v35  ;;  %791 = vst.msk [vmem:[#allocation2 + $0x1f8] sm:$0x3] %vm728_vm2, %v3219_v35 }
  0x2f   : > { %2827 = vmatmul.mubr.msk.f32.gmra.mrb[10].mxu0 %vm372_vm0, %v342_v14  ;;  %792 = vst.msk [vmem:[#allocation2 + $0x200] sm:$0xff] %vm726_vm1, %v3219_v35  ;;  %794 = vst.msk [vmem:[#allocation2 + $0x210] sm:$0xff] %vm726_vm1, %v3219_v35 }
  0x30   : > { %2829 = vmatprep.mubr.msk.f32.mxu0 %vm372_vm0, %v343_v15  ;;  %793 = vst.msk [vmem:[#allocation2 + $0x208] sm:$0x3] %vm728_vm2, %v3219_v35  ;;  %795 = vst.msk [vmem:[#allocation2 + $0x218] sm:$0x3] %vm728_vm2, %v3219_v35 }
  0x31   : > { %796 = vst.msk [vmem:[#allocation2 + $0x220] sm:$0xff] %vm726_vm1, %v3219_v35  ;;  %798 = vst.msk [vmem:[#allocation2 + $0x230] sm:$0xff] %vm726_vm1, %v3219_v35 }
  0x32   : > { %797 = vst.msk [vmem:[#allocation2 + $0x228] sm:$0x3] %vm728_vm2, %v3219_v35  ;;  %799 = vst.msk [vmem:[#allocation2 + $0x238] sm:$0x3] %vm728_vm2, %v3219_v35 }
  0x33   : > { %2830 = vmatmul.mubr.msk.f32.gmra.mrb[12].mxu0 %vm372_vm0, %v344_v16  ;;  %800 = vst.msk [vmem:[#allocation2 + $0x240] sm:$0xff] %vm726_vm1, %v3219_v35  ;;  %802 = vst.msk [vmem:[#allocation2 + $0x250] sm:$0xff] %vm726_vm1, %v3219_v35 }
  0x34   : > { %2832 = vmatprep.mubr.msk.f32.mxu0 %vm372_vm0, %v345_v17  ;;  %801 = vst.msk [vmem:[#allocation2 + $0x248] sm:$0x3] %vm728_vm2, %v3219_v35  ;;  %803 = vst.msk [vmem:[#allocation2 + $0x258] sm:$0x3] %vm728_vm2, %v3219_v35 }
  0x35   : > { %804 = vst.msk [vmem:[#allocation2 + $0x260] sm:$0xff] %vm726_vm1, %v3219_v35 }
  0x36   : > { %805 = vst.msk [vmem:[#allocation2 + $0x268] sm:$0x3] %vm728_vm2, %v3219_v35 }
  0x37   : > { %2833 = vmatmul.mubr.msk.f32.gmra.mrb[14].mxu0 %vm372_vm0, %v346_v18 }
  0x38   : > { %2835 = vmatprep.mubr.msk.f32.mxu0 %vm372_vm0, %v347_v19 }
  0x3b   : > { %2836 = vmatmul.mubr.msk.f32.gmra.mrb[16].mxu0 %vm372_vm0, %v348_v20 }
  0x3c   : > { %2838 = vmatprep.mubr.msk.f32.mxu0 %vm372_vm0, %v349_v21 }
  0x3f   : > { %2839 = vmatmul.mubr.msk.f32.gmra.mrb[18].mxu0 %vm372_vm0, %v350_v22 }
  0x40   : > { %2841 = vmatprep.mubr.msk.f32.mxu0 %vm372_vm0, %v351_v23 }
  0x43   : > { %2842 = vmatmul.mubr.msk.f32.gmra.mrb[20].mxu0 %vm372_vm0, %v352_v24 }
  0x44   : > { %2844 = vmatprep.mubr.msk.f32.mxu0 %vm372_vm0, %v353_v25 }
  0x47   : > { %2845 = vmatmul.mubr.msk.f32.gmra.mrb[22].mxu0 %vm372_vm0, %v354_v26 }
  0x48   : > { %2847 = vmatprep.mubr.msk.f32.mxu0 %vm372_vm0, %v355_v27 }
  0x4b   : > { %2848 = vmatmul.mubr.msk.f32.gmra.mrb[24].mxu0 %vm372_vm0, %v356_v28 }
  0x4c   : > { %2850 = vmatprep.mubr.msk.f32.mxu0 %vm372_vm0, %v357_v29 }
  0x4f   : > { %2851 = vmatmul.mubr.msk.f32.gmra.mrb[26].mxu0 %vm372_vm0, %v358_v30 }
  0x50   : > { %2853 = vmatprep.mubr.msk.f32.mxu0 %vm372_vm0, %v359_v31 }
  0x53   : > { %2854 = vmatmul.mubr.msk.f32.gmra.mrb[28].mxu0 %vm372_vm0, %v360_v32 }
  0x54   : > { %2856 = vmatprep.mubr.msk.f32.mxu0 %vm372_vm0, %v361_v33 }
  0x57   : > { %2857 = vmatmul.mubr.msk.f32.gmra.mrb[30].mxu0 %vm372_vm0, %v362_v34 }
  0x58   : > { %2861 = vmatprep.mubr.msk.f32.mxu0 %vm726_vm1, %v855_v37 }
  0xee   : > { %v2813_v41 = vpop.f32.mrb[0].mxu0 }
  0xef   : > { %v541_v42 = vadd.f32 %v2813_v41, %v3579_v40  ;;  %v535_v43 = vpop.f32.mrb[1].mxu0 }
  0xf0   : > { %v536_v44 = vadd.f32 %v3579_v40, %v535_v43 }
  0xf1   : > { %v695_v45 = vmax.f32 %v541_v42, 0.0 }
  0xf2   : > { %v694_v46 = vmax.f32 %v536_v44, 0.0  ;;  %v2816_v47 = vpop.f32.mrb[2].mxu0 }
  0xf3   : > { %810 = vst.msk [vmem:[#allocation2 + $0x21] sm:$0xff] %vm726_vm1, %v695_v45  ;;  %v551_v48 = vadd.f32 %v2816_v47, %v3579_v40  ;;  %v545_v49 = vpop.f32.mrb[3].mxu0 }
  0xf4   : > { %809 = vst.msk [vmem:[#allocation2 + $0x11] sm:$0xff] %vm726_vm1, %v694_v46  ;;  %v546_v50 = vadd.f32 %v3579_v40, %v545_v49 }
  0xf5   : > { %v697_v51 = vmax.f32 %v551_v48, 0.0 }
  0xf6   : > { %v696_v52 = vmax.f32 %v546_v50, 0.0  ;;  %v2819_v53 = vpop.f32.mrb[4].mxu0 }
  0xf7   : > { %812 = vst.msk [vmem:[#allocation2 + $0x41] sm:$0xff] %vm726_vm1, %v697_v51  ;;  %v561_v54 = vadd.f32 %v2819_v53, %v3579_v40  ;;  %v555_v55 = vpop.f32.mrb[5].mxu0 }
  0xf8   : > { %811 = vst.msk [vmem:[#allocation2 + $0x31] sm:$0xff] %vm726_vm1, %v696_v52  ;;  %v556_v56 = vadd.f32 %v3579_v40, %v555_v55 }
  0xf9   : > { %v699_v57 = vmax.f32 %v561_v54, 0.0 }
  0xfa   : > { %v698_v58 = vmax.f32 %v556_v56, 0.0  ;;  %v2822_v59 = vpop.f32.mrb[6].mxu0 }
  0xfb   : > { %814 = vst.msk [vmem:[#allocation2 + $0x61] sm:$0xff] %vm726_vm1, %v699_v57  ;;  %v571_v60 = vadd.f32 %v2822_v59, %v3579_v40  ;;  %v565_v61 = vpop.f32.mrb[7].mxu0 }
  0xfc   : > { %813 = vst.msk [vmem:[#allocation2 + $0x51] sm:$0xff] %vm726_vm1, %v698_v58  ;;  %v566_v62 = vadd.f32 %v3579_v40, %v565_v61 }
  0xfd   : > { %v701_v63 = vmax.f32 %v571_v60, 0.0 }
  0xfe   : > { %v700_v0 = vmax.f32 %v566_v62, 0.0  ;;  %v2825_v1 = vpop.f32.mrb[8].mxu0 }
  0xff   : > { %816 = vst.msk [vmem:[#allocation2 + $0x81] sm:$0xff] %vm726_vm1, %v701_v63  ;;  %v581_v2 = vadd.f32 %v2825_v1, %v3579_v40  ;;  %v575_v11 = vpop.f32.mrb[9].mxu0 }
 0x100   : > { %815 = vst.msk [vmem:[#allocation2 + $0x71] sm:$0xff] %vm726_vm1, %v700_v0  ;;  %v576_v12 = vadd.f32 %v3579_v40, %v575_v11 }
 0x101   : > { %v703_v13 = vmax.f32 %v581_v2, 0.0 }
 0x102   : > { %v702_v14 = vmax.f32 %v576_v12, 0.0  ;;  %v2828_v15 = vpop.f32.mrb[10].mxu0 }
 0x103   : > { %819 = vst.msk [vmem:[#allocation2 + $0xc1] sm:$0xff] %vm726_vm1, %v703_v13  ;;  %v591_v16 = vadd.f32 %v2828_v15, %v3579_v40  ;;  %v585_v17 = vpop.f32.mrb[11].mxu0 }
 0x104   : > { %818 = vst.msk [vmem:[#allocation2 + $0xb1] sm:$0xff] %vm726_vm1, %v702_v14  ;;  %v586_v18 = vadd.f32 %v3579_v40, %v585_v17 }
 0x105   : > { %v705_v19 = vmax.f32 %v591_v16, 0.0 }
 0x106   : > { %v704_v20 = vmax.f32 %v586_v18, 0.0  ;;  %v2831_v21 = vpop.f32.mrb[12].mxu0 }
 0x107   : > { %821 = vst.msk [vmem:[#allocation2 + $0xe1] sm:$0xff] %vm726_vm1, %v705_v19  ;;  %v601_v22 = vadd.f32 %v2831_v21, %v3579_v40  ;;  %v595_v23 = vpop.f32.mrb[13].mxu0 }
 0x108   : > { %820 = vst.msk [vmem:[#allocation2 + $0xd1] sm:$0xff] %vm726_vm1, %v704_v20  ;;  %v596_v24 = vadd.f32 %v3579_v40, %v595_v23 }
 0x109   : > { %v707_v25 = vmax.f32 %v601_v22, 0.0  ;;  %v845_v22 = vld [vmem:[#allocation2 + $0x1e0] sm:$0xff] }
 0x10a   : > { %v706_v26 = vmax.f32 %v596_v24, 0.0  ;;  %v2834_v27 = vpop.f32.mrb[14].mxu0 }
 0x10b   : > { %823 = vst.msk [vmem:[#allocation2 + $0x101] sm:$0xff] %vm726_vm1, %v707_v25  ;;  %v611_v28 = vadd.f32 %v2834_v27, %v3579_v40  ;;  %v605_v29 = vpop.f32.mrb[15].mxu0 }
 0x10c   : > { %822 = vst.msk [vmem:[#allocation2 + $0xf1] sm:$0xff] %vm726_vm1, %v706_v26  ;;  %v606_v30 = vadd.f32 %v3579_v40, %v605_v29 }
 0x10d   : > { %v709_v31 = vmax.f32 %v611_v28, 0.0 }
 0x10e   : > { %v708_v32 = vmax.f32 %v606_v30, 0.0  ;;  %v2837_v33 = vpop.f32.mrb[16].mxu0 }
 0x10f   : > { %825 = vst.msk [vmem:[#allocation2 + $0x121] sm:$0xff] %vm726_vm1, %v709_v31  ;;  %v621_v34 = vadd.f32 %v2837_v33, %v3579_v40  ;;  %v615_v35 = vpop.f32.mrb[17].mxu0 }
 0x110   : > { %824 = vst.msk [vmem:[#allocation2 + $0x111] sm:$0xff] %vm726_vm1, %v708_v32  ;;  %v616_v36 = vadd.f32 %v3579_v40, %v615_v35 }
 0x111   : > { %v711_v37 = vmax.f32 %v621_v34, 0.0 }
 0x112   : > { %v710_v41 = vmax.f32 %v616_v36, 0.0  ;;  %v2840_v42 = vpop.f32.mrb[18].mxu0 }
 0x113   : > { %828 = vst.msk [vmem:[#allocation2 + $0x161] sm:$0xff] %vm726_vm1, %v711_v37  ;;  %v631_v43 = vadd.f32 %v2840_v42, %v3579_v40  ;;  %v625_v44 = vpop.f32.mrb[19].mxu0 }
 0x114   : > { %827 = vst.msk [vmem:[#allocation2 + $0x151] sm:$0xff] %vm726_vm1, %v710_v41  ;;  %v626_v45 = vadd.f32 %v3579_v40, %v625_v44  ;;  %v2593_v41 = vld [vmem:[%s3927_s3 + $0x18] sm:$0xff]  ;;  %v1123_v44 = vld [vmem:[#allocation2 + $0x1e1] sm:$0xff] }
 0x115   : > { %v713_v46 = vmax.f32 %v631_v43, 0.0 }
 0x116   : > { %v712_v47 = vmax.f32 %v626_v45, 0.0  ;;  %v2843_v48 = vpop.f32.mrb[20].mxu0 }
 0x117   : > { %830 = vst.msk [vmem:[#allocation2 + $0x181] sm:$0xff] %vm726_vm1, %v713_v46  ;;  %v641_v49 = vadd.f32 %v2843_v48, %v3579_v40  ;;  %v635_v50 = vpop.f32.mrb[21].mxu0  ;;  %v2602_v46 = vld [vmem:[%s3927_s3 + $0x20] sm:$0xff] }
 0x118   : > { %829 = vst.msk [vmem:[#allocation2 + $0x171] sm:$0xff] %vm726_vm1, %v712_v47  ;;  %v636_v51 = vadd.f32 %v3579_v40, %v635_v50 }
 0x119   : > { %v715_v52 = vmax.f32 %v641_v49, 0.0 }
 0x11a   : > { %v714_v53 = vmax.f32 %v636_v51, 0.0  ;;  %v2846_v54 = vpop.f32.mrb[22].mxu0  ;;  %v3631_v59 = vld [vmem:[#allocation2 + $0x161] sm:$0xff] }
 0x11b   : > { %832 = vst.msk [vmem:[#allocation2 + $0x1a1] sm:$0xff] %vm726_vm1, %v715_v52  ;;  %v651_v55 = vadd.f32 %v2846_v54, %v3579_v40  ;;  %v645_v56 = vpop.f32.mrb[23].mxu0  ;;  %v3625_v57 = vld [vmem:[#allocation2 + $0x151] sm:$0xff]  ;;  %v1271_v54 = vld [vmem:[#allocation2 + $0xc0] sm:$0xff] }
 0x11c   : > { %831 = vst.msk [vmem:[#allocation2 + $0x191] sm:$0xff] %vm726_vm1, %v714_v53  ;;  %v646_v58 = vadd.f32 %v3579_v40, %v645_v56  ;;  %2862 = vmatmul.mubr.msk.f32.vlgmr.msra.gmra.mrb[32].mxu0 %vm726_vm1, %v3625_v57  ;;  %v1270_v53 = vld [vmem:[#allocation2 + $0xb0] sm:$0xff] }
 0x11d   : > { %v717_v60 = vmax.f32 %v651_v55, 0.0  ;;  %2864 = vmatprep.mubr.msk.f32.mxu0 %vm726_vm1, %v3631_v59  ;;  %2874 = vmatpush3.msra.mxu0 %v3565_v38  ;;  %v2611_v55 = vld [vmem:[%s3927_s3 + $0x28] sm:$0xff]  ;;  %v1272_v56 = vld [vmem:[#allocation2 + $0xd0] sm:$0xff] }
 0x11e   : > { %v716_v61 = vmax.f32 %v646_v58, 0.0  ;;  %v2849_v62 = vpop.f32.mrb[24].mxu0  ;;  %v3644_v11 = vld [vmem:[#allocation2 + $0x181] sm:$0xff] }
 0x11f   : > { %834 = vst.msk [vmem:[#allocation2 + $0x1c1] sm:$0xff] %vm726_vm1, %v717_v60  ;;  %v661_v63 = vadd.f32 %v2849_v62, %v3579_v40  ;;  %v655_v0 = vpop.f32.mrb[25].mxu0  ;;  %v3638_v1 = vld [vmem:[#allocation2 + $0x171] sm:$0xff]  ;;  %v1273_v58 = vld [vmem:[#allocation2 + $0xe0] sm:$0xff] }
 0x120   : > { %833 = vst.msk [vmem:[#allocation2 + $0x1b1] sm:$0xff] %vm726_vm1, %v716_v61  ;;  %v656_v2 = vadd.f32 %v3579_v40, %v655_v0  ;;  %2865 = vmatmul.mubr.msk.f32.gmra.mrb[34].mxu0 %vm726_vm1, %v3638_v1  ;;  %v1274_v60 = vld [vmem:[#allocation2 + $0xf0] sm:$0xff]  ;;  %v1275_v61 = vld [vmem:[#allocation2 + $0x100] sm:$0xff] }
 0x121   : > { %v719_v12 = vmax.f32 %v661_v63, 0.0  ;;  %2867 = vmatprep.mubr.msk.f32.mxu0 %vm726_vm1, %v3644_v11  ;;  %v1276_v62 = vld [vmem:[#allocation2 + $0x110] sm:$0xff]  ;;  %v1277_v63 = vld [vmem:[#allocation2 + $0x120] sm:$0xff] }
 0x122   : > { %v718_v38 = vmax.f32 %v656_v2, 0.0  ;;  %v2852_v13 = vpop.f32.mrb[26].mxu0  ;;  %v3656_v18 = vld [vmem:[#allocation2 + $0x1a1] sm:$0xff]  ;;  %v1417_v0 = vld [vmem:[#allocation2 + $0x11] sm:$0xff] }
 0x123   : > { %837 = vst.msk [vmem:[#allocation2 + $0x201] sm:$0xff] %vm726_vm1, %v719_v12  ;;  %v671_v14 = vadd.f32 %v2852_v13, %v3579_v40  ;;  %v665_v15 = vpop.f32.mrb[27].mxu0  ;;  %v3650_v16 = vld [vmem:[#allocation2 + $0x191] sm:$0xff]  ;;  %v1418_v2 = vld [vmem:[#allocation2 + $0x21] sm:$0xff] }
 0x124   : > { %836 = vst.msk [vmem:[#allocation2 + $0x1f1] sm:$0xff] %vm726_vm1, %v718_v38  ;;  %v666_v17 = vadd.f32 %v3579_v40, %v665_v15  ;;  %2868 = vmatmul.mubr.msk.f32.gmra.mrb[36].mxu0 %vm726_vm1, %v3650_v16  ;;  %v2620_v12 = vld [vmem:[%s3927_s3 + $0x30] sm:$0xff]  ;;  %v1420_v13 = vld [vmem:[#allocation2 + $0x41] sm:$0xff] }
 0x125   : > { %v721_v19 = vmax.f32 %v671_v14, 0.0  ;;  %2870 = vmatprep.mubr.msk.f32.mxu0 %vm726_vm1, %v3656_v18  ;;  %v1419_v38 = vld [vmem:[#allocation2 + $0x31] sm:$0xff]  ;;  %v1422_v15 = vld [vmem:[#allocation2 + $0x61] sm:$0xff] }
 0x126   : > { %v720_v20 = vmax.f32 %v666_v17, 0.0  ;;  %v2855_v21 = vpop.f32.mrb[28].mxu0  ;;  %v1421_v14 = vld [vmem:[#allocation2 + $0x51] sm:$0xff] }
 0x127   : > { %839 = vst.msk [vmem:[#allocation2 + $0x221] sm:$0xff] %vm726_vm1, %v721_v19  ;;  %v681_v23 = vadd.f32 %v2855_v21, %v3579_v40  ;;  %v675_v24 = vpop.f32.mrb[29].mxu0  ;;  %v3662_v25 = vld [vmem:[#allocation2 + $0x1b1] sm:$0xff]  ;;  %v1424_v19 = vld [vmem:[#allocation2 + $0x81] sm:$0xff] }
 0x128   : > { %838 = vst.msk [vmem:[#allocation2 + $0x211] sm:$0xff] %vm726_vm1, %v720_v20  ;;  %v676_v26 = vadd.f32 %v3579_v40, %v675_v24  ;;  %2871 = vmatmul.mubr.msk.f32.gmra.mrb[38].mxu0 %vm726_vm1, %v3662_v25  ;;  %v1423_v17 = vld [vmem:[#allocation2 + $0x71] sm:$0xff]  ;;  %v1565_v21 = vld [vmem:[#allocation2 + $0xc1] sm:$0xff] }
 0x129   : > { %v723_v27 = vmax.f32 %v681_v23, 0.0  ;;  %2875 = vmatprep.mubr.msk.f32.mxu0 %vm726_vm1, %v845_v22  ;;  %v1564_v20 = vld [vmem:[#allocation2 + $0xb1] sm:$0xff]  ;;  %v1567_v24 = vld [vmem:[#allocation2 + $0xe1] sm:$0xff] }
 0x12a   : > { %v722_v28 = vmax.f32 %v676_v26, 0.0  ;;  %v2858_v29 = vpop.f32.mrb[30].mxu0  ;;  %v3669_v30 = vld [vmem:[#allocation2 + $0x200] sm:$0xff]  ;;  %v2629_v22 = vld [vmem:[%s3927_s3 + $0x38] sm:$0xff] }
 0x12b   : > { %841 = vst.msk [vmem:[#allocation2 + $0x241] sm:$0xff] %vm726_vm1, %v723_v27  ;;  %v691_v31 = vadd.f32 %v2858_v29, %v3579_v40  ;;  %v685_v32 = vpop.f32.mrb[31].mxu0  ;;  %2878 = vmatprep.mubr.msk.f32.mxu1 %vm726_vm1, %v3669_v30  ;;  %v3675_v33 = vld [vmem:[#allocation2 + $0x1f0] sm:$0xff]  ;;  %v3715_v47 = vld [vmem:[#allocation2 + $0x201] sm:$0xff] }
 0x12c   : > { %840 = vst.msk [vmem:[#allocation2 + $0x231] sm:$0xff] %vm726_vm1, %v722_v28  ;;  %v686_v34 = vadd.f32 %v3579_v40, %v685_v32  ;;  %2876 = vmatmul.mubr.msk.f32.vlgmr.msra.gmra.mrb[32].mxu0 %vm726_vm1, %v3675_v33  ;;  %v1566_v23 = vld [vmem:[#allocation2 + $0xd1] sm:$0xff]  ;;  %v1569_v27 = vld [vmem:[#allocation2 + $0x101] sm:$0xff] }
 0x12d   : > { %v725_v35 = vmax.f32 %v691_v31, 0.0  ;;  %v1568_v26 = vld [vmem:[#allocation2 + $0xf1] sm:$0xff]  ;;  %v1571_v29 = vld [vmem:[#allocation2 + $0x121] sm:$0xff] }
 0x12e   : > { %v724_v36 = vmax.f32 %v686_v34, 0.0  ;;  %v3690_v42 = vld [vmem:[#allocation2 + $0x220] sm:$0xff]  ;;  %v1570_v28 = vld [vmem:[#allocation2 + $0x111] sm:$0xff] }
 0x12f   : > { %843 = vst.msk [vmem:[#allocation2 + $0x261] sm:$0xff] %vm726_vm1, %v725_v35  ;;  %v3682_v37 = vld [vmem:[#allocation2 + $0x210] sm:$0xff]  ;;  %v3723_v49 = vld [vmem:[#allocation2 + $0x221] sm:$0xff] }
 0x130   : > { %842 = vst.msk [vmem:[#allocation2 + $0x251] sm:$0xff] %vm726_vm1, %v724_v36  ;;  %2879 = vmatmul.mubr.msk.f32.vlgmr.msra.gmra.mrb[0].mxu1 %vm726_vm1, %v3682_v37  ;;  %v3719_v48 = vld [vmem:[#allocation2 + $0x211] sm:$0xff]  ;;  %v2638_v31 = vld [vmem:[%s3927_s3 + $0x40] sm:$0xff]  ;;  %v2313_v35 = vld [vmem:[%s3931_s7 + $0x8] sm:$0xff] }
 0x131   : > { %2888 = vmatpush3.msra.mxu1 %v3573_v39  ;;  %2881 = vmatprep.mubr.msk.f32.mxu1 %vm726_vm1, %v3690_v42  ;;  %v3708_v39 = vld [vmem:[#allocation2 + $0x1f1] sm:$0xff]  ;;  %v2312_v34 = vld [vmem:[%s3931_s7] sm:$0xff] }
 0x132   : > { %2901 = vmatprep.subr.mxu1 %v2593_v41  ;;  %v3699_v43 = vld [vmem:[#allocation2 + $0x240] sm:$0xff]  ;;  %v3019_v36 = vpack.c.bf16 %v2313_v35, %v2312_v34 }
 0x133   : > { %v3695_v40 = vld [vmem:[#allocation2 + $0x230] sm:$0xff]  ;;  %v3731_v51 = vld [vmem:[#allocation2 + $0x241] sm:$0xff] }
 0x134   : > { %2882 = vmatmul.mubr.msk.f32.gmra.mrb[2].mxu1 %vm726_vm1, %v3695_v40  ;;  %v3727_v50 = vld [vmem:[#allocation2 + $0x231] sm:$0xff] }
 0x135   : > { %2884 = vmatprep.mubr.msk.f32.mxu1 %vm726_vm1, %v3699_v43 }
 0x136   : > { %v1718_v32 = vld [vmem:[#allocation2 + $0x260] sm:$0xff] }
 0x137   : > { %v3703_v45 = vld [vmem:[#allocation2 + $0x250] sm:$0xff] }
 0x138   : > { %2885 = vmatmul.mubr.msk.f32.gmra.mrb[4].mxu1 %vm726_vm1, %v3703_v45  ;;  %v3735_v52 = vld [vmem:[#allocation2 + $0x251] sm:$0xff] }
 0x139   : > { %2889 = vmatprep.mubr.msk.f32.mxu1 %vm726_vm1, %v1123_v44 }
 0x13c   : > { %2890 = vmatmul.mubr.msk.f32.vlgmr.msra.gmra.mrb[6].mxu1 %vm726_vm1, %v3708_v39 }
 0x13d   : > { %2902 = vmatpush3.msra.mxu1 %v2593_v41  ;;  %2892 = vmatprep.mubr.msk.f32.mxu1 %vm726_vm1, %v3715_v47 }
 0x13e   : > { %2915 = vmatprep.subr.mxu1 %v2602_v46 }
 0x140   : > { %2893 = vmatmul.mubr.msk.f32.gmra.mrb[0].mxu1 %vm726_vm1, %v3719_v48 }
 0x141   : > { %2895 = vmatprep.mubr.msk.f32.mxu1 %vm726_vm1, %v3723_v49 }
 0x144   : > { %2896 = vmatmul.mubr.msk.f32.gmra.mrb[2].mxu1 %vm726_vm1, %v3727_v50 }
 0x145   : > { %2898 = vmatprep.mubr.msk.f32.mxu1 %vm726_vm1, %v3731_v51 }
 0x148   : > { %2899 = vmatmul.mubr.msk.f32.gmra.mrb[4].mxu1 %vm726_vm1, %v3735_v52 }
 0x149   : > { %2903 = vmatprep.mubr.msk.f32.mxu1 %vm726_vm1, %v1270_v53 }
 0x14c   : > { %2904 = vmatmul.mubr.msk.f32.vlgmr.msra.gmra.mrb[6].mxu1 %vm726_vm1, %v1271_v54 }
 0x14d   : > { %2916 = vmatpush3.msra.mxu1 %v2602_v46  ;;  %2906 = vmatprep.mubr.msk.f32.mxu1 %vm726_vm1, %v1272_v56 }
 0x14e   : > { %2929 = vmatprep.subr.mxu1 %v2611_v55 }
 0x150   : > { %2907 = vmatmul.mubr.msk.f32.gmra.mrb[0].mxu1 %vm726_vm1, %v1273_v58 }
 0x151   : > { %2909 = vmatprep.mubr.msk.f32.mxu1 %vm726_vm1, %v1274_v60 }
 0x154   : > { %2910 = vmatmul.mubr.msk.f32.gmra.mrb[2].mxu1 %vm726_vm1, %v1275_v61 }
 0x155   : > { %2912 = vmatprep.mubr.msk.f32.mxu1 %vm726_vm1, %v1276_v62 }
 0x158   : > { %2913 = vmatmul.mubr.msk.f32.gmra.mrb[4].mxu1 %vm726_vm1, %v1277_v63 }
 0x159   : > { %2917 = vmatprep.mubr.msk.f32.mxu1 %vm726_vm1, %v1417_v0 }
 0x15c   : > { %2918 = vmatmul.mubr.msk.f32.vlgmr.msra.gmra.mrb[6].mxu1 %vm726_vm1, %v1418_v2 }
 0x15d   : > { %2930 = vmatpush3.msra.mxu1 %v2611_v55  ;;  %2920 = vmatprep.mubr.msk.f32.mxu1 %vm726_vm1, %v1419_v38 }
 0x15e   : > { %2943 = vmatprep.subr.mxu1 %v2620_v12 }
 0x160   : > { %2921 = vmatmul.mubr.msk.f32.gmra.mrb[0].mxu1 %vm726_vm1, %v1420_v13 }
 0x161   : > { %2923 = vmatprep.mubr.msk.f32.mxu1 %vm726_vm1, %v1421_v14 }
 0x164   : > { %2924 = vmatmul.mubr.msk.f32.gmra.mrb[2].mxu1 %vm726_vm1, %v1422_v15 }
 0x165   : > { %2926 = vmatprep.mubr.msk.f32.mxu1 %vm726_vm1, %v1423_v17 }
 0x168   : > { %2927 = vmatmul.mubr.msk.f32.gmra.mrb[4].mxu1 %vm726_vm1, %v1424_v19 }
 0x169   : > { %2931 = vmatprep.mubr.msk.f32.mxu1 %vm726_vm1, %v1564_v20 }
 0x16c   : > { %2932 = vmatmul.mubr.msk.f32.vlgmr.msra.gmra.mrb[6].mxu1 %vm726_vm1, %v1565_v21 }
 0x16d   : > { %2944 = vmatpush3.msra.mxu1 %v2620_v12  ;;  %2934 = vmatprep.mubr.msk.f32.mxu1 %vm726_vm1, %v1566_v23 }
 0x16e   : > { %2957 = vmatprep.subr.mxu1 %v2629_v22 }
 0x170   : > { %2935 = vmatmul.mubr.msk.f32.gmra.mrb[0].mxu1 %vm726_vm1, %v1567_v24 }
 0x171   : > { %2937 = vmatprep.mubr.msk.f32.mxu1 %vm726_vm1, %v1568_v26 }
 0x174   : > { %2938 = vmatmul.mubr.msk.f32.gmra.mrb[2].mxu1 %vm726_vm1, %v1569_v27 }
 0x175   : > { %2940 = vmatprep.mubr.msk.f32.mxu1 %vm726_vm1, %v1570_v28 }
 0x178   : > { %2941 = vmatmul.mubr.msk.f32.gmra.mrb[4].mxu1 %vm726_vm1, %v1571_v29 }
 0x179   : > { %2945 = vmatprep.mubr.msk.f32.mxu1 %vm726_vm1, %v3675_v33 }
 0x17c   : > { %2946 = vmatmul.mubr.msk.f32.vlgmr.msra.gmra.mrb[6].mxu1 %vm726_vm1, %v3669_v30 }
 0x17d   : > { %2958 = vmatpush3.msra.mxu1 %v2629_v22  ;;  %2948 = vmatprep.mubr.msk.f32.mxu1 %vm726_vm1, %v3682_v37 }
 0x17e   : > { %2971 = vmatprep.subr.mxu1 %v2638_v31 }
 0x180   : > { %2949 = vmatmul.mubr.msk.f32.gmra.mrb[0].mxu1 %vm726_vm1, %v3690_v42 }
 0x181   : > { %2951 = vmatprep.mubr.msk.f32.mxu1 %vm726_vm1, %v3695_v40  ;;  %v2647_v40 = vld [vmem:[%s3928_s4] ss:$0 sm:$0xff] }
 0x184   : > { %2952 = vmatmul.mubr.msk.f32.gmra.mrb[2].mxu1 %vm726_vm1, %v3699_v43 }
 0x185   : > { %2954 = vmatprep.mubr.msk.f32.mxu1 %vm726_vm1, %v3703_v45 }
 0x188   : > { %2955 = vmatmul.mubr.msk.f32.gmra.mrb[4].mxu1 %vm726_vm1, %v1718_v32 }
 0x189   : > { %2959 = vmatprep.mubr.msk.f32.mxu1 %vm726_vm1, %v3625_v57  ;;  %v1865_v57 = vld [vmem:[#allocation2 + $0x1c1] sm:$0xff] }
 0x18c   : > { %2960 = vmatmul.mubr.msk.f32.vlgmr.msra.gmra.mrb[6].mxu1 %vm726_vm1, %v3631_v59  ;;  %v2012_v59 = vld [vmem:[#allocation2 + $0x261] sm:$0xff] }
 0x18d   : > { %2972 = vmatpush3.msra.mxu1 %v2638_v31  ;;  %2962 = vmatprep.mubr.msk.f32.mxu1 %vm726_vm1, %v3638_v1 }
 0x190   : > { %2963 = vmatmul.mubr.msk.f32.gmra.mrb[0].mxu1 %vm726_vm1, %v3644_v11 }
 0x191   : > { %2965 = vmatprep.mubr.msk.f32.mxu1 %vm726_vm1, %v3650_v16  ;;  %v2175_v16 = vld [vmem:[%s3929_s5] sm:$0xff] }
 0x192   : > { %2985 = vmatprep.subr.mxu0 %v2175_v16 }
 0x193   : > { %2986 = vmatpush3.msra.mxu0 %v2175_v16 }
 0x194   : > { %2966 = vmatmul.mubr.msk.f32.gmra.mrb[2].mxu1 %vm726_vm1, %v3656_v18  ;;  %3020 = vmatprep.subr.bf16.mxu0 %v3019_v36 }
 0x195   : > { %2968 = vmatprep.mubr.msk.f32.mxu1 %vm726_vm1, %v3662_v25 }
 0x198   : > { %2969 = vmatmul.mubr.msk.f32.gmra.mrb[4].mxu1 %vm726_vm1, %v1865_v57 }
 0x199   : > { %2973 = vmatprep.mubr.msk.f32.mxu1 %vm726_vm1, %v3708_v39 }
 0x19c   : > { %2974 = vmatmul.mubr.msk.f32.vlgmr.msra.gmra.mrb[6].mxu1 %vm726_vm1, %v3715_v47 }
 0x19d   : > { %2976 = vmatprep.mubr.msk.f32.mxu1 %vm726_vm1, %v3719_v48 }
 0x1a0   : > { %2977 = vmatmul.mubr.msk.f32.gmra.mrb[0].mxu1 %vm726_vm1, %v3723_v49 }
 0x1a1   : > { %2979 = vmatprep.mubr.msk.f32.mxu1 %vm726_vm1, %v3727_v50 }
 0x1a4   : > { %2980 = vmatmul.mubr.msk.f32.gmra.mrb[2].mxu1 %vm726_vm1, %v3731_v51 }
 0x1a5   : > { %2982 = vmatprep.mubr.msk.f32.mxu1 %vm726_vm1, %v3735_v52 }
 0x1a8   : > { %2983 = vmatmul.mubr.msk.f32.gmra.mrb[4].mxu1 %vm726_vm1, %v2012_v59 }
 0x1f3   : > { %v2866_v1 = vpop.f32.mrb[34].mxu0 }
 0x1f4   : > { %v965_v11 = vpop.f32.mrb[35].mxu0 }
 0x1f7   : > { %v2869_v18 = vpop.f32.mrb[36].mxu0 }
 0x1f8   : > { %v975_v25 = vpop.f32.mrb[37].mxu0 }
 0x1fb   : > { %v2872_v30 = vpop.f32.mrb[38].mxu0 }
 0x1fc   : > { %v985_v33 = vpop.f32.mrb[39].mxu0 }
 0x1ff   : > { %v2877_v37 = vpop.f32.mrb[32].mxu0 }
 0x200   : > { %v1084_v41 = vpop.f32.mrb[33].mxu0 }
 0x26f   : > { %v2975_v42 = vpop.f32.mrb[6].mxu1 }
 0x270   : > { %v3025_v43 = vadd.f32 %v2975_v42, %v2877_v37  ;;  %v2105_v44 = vpop.f32.mrb[7].mxu1 }
 0x271   : > { %v3026_v45 = vadd.f32 %v2105_v44, %v1084_v41 }
 0x272   : > { %v2160_v39 = vadd.f32 %v3025_v43, %v2647_v40 }
 0x273   : > { %v2159_v46 = vadd.f32 %v3026_v45, %v2647_v40  ;;  %v2978_v47 = vpop.f32.mrb[0].mxu1 }
 0x274   : > { %v3027_v48 = vadd.f32 %v2978_v47, %v2866_v1  ;;  %v2115_v49 = vpop.f32.mrb[1].mxu1  ;;  %v2168_v52 = vmax.f32 %v2160_v39, 0.0 }
 0x275   : > { %v2167_v50 = vmax.f32 %v2159_v46, 0.0  ;;  %v3028_v51 = vadd.f32 %v2115_v49, %v965_v11 }
 0x276   : > { %v2162_v53 = vadd.f32 %v3027_v48, %v2647_v40 }
 0x277   : > { %v2161_v54 = vadd.f32 %v3028_v51, %v2647_v40  ;;  %v2981_v55 = vpop.f32.mrb[2].mxu1  ;;  %2987 = vmatprep.mubr.msk.f32.mxu0 %vm726_vm1, %v2167_v50 }
 0x278   : > { %v3029_v56 = vadd.f32 %v2981_v55, %v2869_v18  ;;  %v2125_v58 = vpop.f32.mrb[3].mxu1  ;;  %2988 = vmatmul.mubr.msk.f32.vlgmr.msra.gmra.mrb[40].mxu0 %vm726_vm1, %v2168_v52  ;;  %v2170_v62 = vmax.f32 %v2162_v53, 0.0 }
 0x279   : > { %v2169_v60 = vmax.f32 %v2161_v54, 0.0  ;;  %v3030_v61 = vadd.f32 %v2125_v58, %v975_v25  ;;  %3022 = vmatpush3.bf16.msra.mxu0 %v3019_v36 }
 0x27a   : > { %v2164_v63 = vadd.f32 %v3029_v56, %v2647_v40 }
 0x27b   : > { %v2163_v0 = vadd.f32 %v3030_v61, %v2647_v40  ;;  %v2984_v2 = vpop.f32.mrb[4].mxu1  ;;  %2990 = vmatprep.mubr.msk.f32.mxu0 %vm726_vm1, %v2169_v60 }
 0x27c   : > { %v3031_v12 = vadd.f32 %v2984_v2, %v2872_v30  ;;  %v2135_v38 = vpop.f32.mrb[5].mxu1  ;;  %2991 = vmatmul.mubr.msk.f32.gmra.mrb[42].mxu0 %vm726_vm1, %v2170_v62  ;;  %v2172_v15 = vmax.f32 %v2164_v63, 0.0 }
 0x27d   : > { %v2171_v13 = vmax.f32 %v2163_v0, 0.0  ;;  %v3032_v14 = vadd.f32 %v2135_v38, %v985_v33 }
 0x27e   : > { %v2166_v17 = vadd.f32 %v3031_v12, %v2647_v40 }
 0x27f   : > { %v2165_v19 = vadd.f32 %v3032_v14, %v2647_v40  ;;  %2993 = vmatprep.mubr.msk.f32.mxu0 %vm726_vm1, %v2171_v13 }
 0x280   : > { %2994 = vmatmul.mubr.msk.f32.gmra.mrb[44].mxu0 %vm726_vm1, %v2172_v15  ;;  %v2174_v21 = vmax.f32 %v2166_v17, 0.0 }
 0x281   : > { %v2173_v20 = vmax.f32 %v2165_v19, 0.0 }
 0x283   : > { %2996 = vmatprep.mubr.msk.f32.mxu0 %vm726_vm1, %v2173_v20 }
 0x284   : > { %2997 = vmatmul.mubr.msk.f32.gmra.mrb[46].mxu0 %vm726_vm1, %v2174_v21 }
 0x285   : > { %3003 = vmatprep.mubr.msk.f32.mxu0 %vm372_vm0, %v3335_v3  ;;  %v2648_v3 = vld [vmem:[%s3930_s6] ss:$0 sm:$0xff] }
 0x288   : > { %3004 = vmatmul.mubr.msk.f32.vlgmr.msra.gmra.mrb[40].mxu0 %vm372_vm0, %v3338_v4  ;;  %v2657_v4 = vld [vmem:[%s3932_s8] ss:$0 sm:$0xff] }
 0x289   : > { %3006 = vmatprep.mubr.msk.f32.mxu0 %vm372_vm0, %v3341_v5 }
 0x28c   : > { %3007 = vmatmul.mubr.msk.f32.gmra.mrb[42].mxu0 %vm372_vm0, %v3350_v6 }
 0x28d   : > { %3009 = vmatprep.mubr.msk.f32.mxu0 %vm372_vm0, %v3353_v7  ;;  %v3039_v7 = vadd.f32 %v2657_v4, %v2648_v3 }
 0x290   : > { %3010 = vmatmul.mubr.msk.f32.gmra.mrb[44].mxu0 %vm372_vm0, %v3360_v8 }
 0x291   : > { %3012 = vmatprep.mubr.msk.f32.mxu0 %vm372_vm0, %v3363_v9 }
 0x294   : > { %3013 = vmatmul.mubr.msk.f32.gmra.mrb[46].mxu0 %vm372_vm0, %v3370_v10 }
 0x35b   : > { %v3005_v5 = vpop.f32.mrb[40].mxu0 }
 0x35c   : > { %v3033_v6 = vadd.f32 %v3005_v5, %v2648_v3  ;;  %v2387_v8 = vpop.f32.mrb[41].mxu0 }
 0x35d   : > { %v3035_v22 = vadd.f32 %v2648_v3, %v2387_v8 }
 0x35e   : > { %v3034_v9 = vadd.f32 %v3033_v6, %v2657_v4 }
 0x35f   : > { %v3036_v23 = vadd.f32 %v3035_v22, %v2657_v4  ;;  %v3008_v10 = vpop.f32.mrb[42].mxu0 }
 0x360   : > { %v2435_v24 = vmax.f32 %v3034_v9, 0.0  ;;  %v3038_v26 = vadd.f32 %v3039_v7, %v3008_v10  ;;  %v2397_v27 = vpop.f32.mrb[43].mxu0 }
 0x361   : > { %v2434_v28 = vmax.f32 %v3036_v23, 0.0  ;;  %v3040_v29 = vadd.f32 %v3039_v7, %v2397_v27 }
 0x362   : > { %2444 = vst.msk [vmem:[%s325_s28 + $0x8] sm:$0xff] %vm2442_vm3, %v2435_v24  ;;  %v2437_v31 = vmax.f32 %v3038_v26, 0.0 }
 0x363   : > { %2443 = vst.msk [vmem:[%s325_s28] sm:$0xff] %vm2442_vm3, %v2434_v28  ;;  %v2436_v32 = vmax.f32 %v3040_v29, 0.0  ;;  %v3011_v57 = vpop.f32.mrb[44].mxu0 }
 0x364   : > { %2446 = vst.msk [vmem:[%s325_s28 + $0x18] sm:$0xff] %vm2442_vm3, %v2437_v31  ;;  %v3042_v59 = vadd.f32 %v3039_v7, %v3011_v57  ;;  %v2407_v1 = vpop.f32.mrb[45].mxu0 }
 0x365   : > { %2445 = vst.msk [vmem:[%s325_s28 + $0x10] sm:$0xff] %vm2442_vm3, %v2436_v32  ;;  %v3044_v11 = vadd.f32 %v3039_v7, %v2407_v1 }
 0x366   : > { %v2439_v16 = vmax.f32 %v3042_v59, 0.0 }
 0x367   : > { %v2438_v18 = vmax.f32 %v3044_v11, 0.0  ;;  %v3014_v25 = vpop.f32.mrb[46].mxu0 }
 0x368   : > { %2448 = vst.msk [vmem:[%s325_s28 + $0x28] sm:$0xff] %vm2442_vm3, %v2439_v16  ;;  %v3046_v30 = vadd.f32 %v3039_v7, %v3014_v25  ;;  %v2417_v33 = vpop.f32.mrb[47].mxu0 }
 0x369   : > { %2447 = vst.msk [vmem:[%s325_s28 + $0x20] sm:$0xff] %vm2442_vm3, %v2438_v18  ;;  %v3048_v34 = vadd.f32 %v3039_v7, %v2417_v33 }
 0x36a   : > { %v2441_v35 = vmax.f32 %v3046_v30, 0.0 }
 0x36b   : > { %v2440_v36 = vmax.f32 %v3048_v34, 0.0 }
 0x36c   : > { %2450 = vst.msk [vmem:[%s325_s28 + $0x38] sm:$0xff] %vm2442_vm3, %v2441_v35 }
 0x36d   : > { %2449 = vst.msk [vmem:[%s325_s28 + $0x30] sm:$0xff] %vm2442_vm3, %v2440_v36 }
 0x36e   : > { %3168 = shalt.err (!%p3165_p3)
}
 0x36f   : > { %s3169_s22 = scalar_lea.hbm %s3875_s21, 1024  ;;  %s3173_s29 = scalar_lea.hbm %s3933_s9, 2048 }
 0x370   : > { %p3170_p4 = scmp.ne.s32.totalorder %s3875_s21, %s3169_s22  ;;  %p3174_p9 = scmp.lt.u32.totalorder %s3875_s21, %s3933_s9 }
 0x371   : > { %p3175_p10 = scmp.lt.u32.totalorder %s3173_s29, %s3169_s22  ;;  %p3177_p12 = scmp.lt.u32.totalorder %s3169_s22, %s3875_s21 }
 0x372   : > { %p3171_p7 = pnand %p3170_p4, %p3311_p5 }
 0x373   : > { %p3176_p11 = por %p3175_p10, %p3174_p9 }
 0x374   : > { %p3172_p8 = pneg %p3171_p7 }
 0x375   : > { %p3178_p13 = por %p3177_p12, %p3176_p11 }
 0x377   : > { %p3179_p0 = pnand %p3178_p13, %p3172_p8 }
 0x379   : > { %3182 = shalt.err (!%p3179_p0)
}
 0x37a   : > { %s3221_s23 = smov 128   ;;  %s3222_s24 = smov 8  }
 0x37b   : > { %3113 = dma.vmem_to_hbm [thread:$0]  (%p3311_p5), %s3877_s14, 1024, %s3875_s21, %s3883_s13, %s3221_s23, %s3221_s23, %s3222_s24  }
 0x37c PF: > { %p3119_p1 = scmp.ge.s32.totalorder %s3217_s12, 2  ;;  %s2480_s25 = sand.u32 1, %s3205_s30  }
 0x37d   : > { %s2481_s26 = scalar_lea.sflag [#allocation4], %s2480_s25 }
 0x37e   : > { %p3116_p2 = pnand %p3119_p1, %p3315_p6 }
 0x380   : > { %3200 = dma.done.wait (!%p3116_p2), %s2481_s26, 1024  }
 0x381   : > { %3202 = vsyncadd (!%p3116_p2), %s2481_s26, 4294966272  ;;  %p19_p3 = scmp.ge.s32.totalorder %s3298_s15, 4   ;;  %s3936_s30 = smov %s3209_s10 }
 0x382   : > { %s3937_s10 = smov %s3213_s11  ;;  %s3938_s11 = smov %s3309_s18 }
 0x383   : > { %s3939_s12 = smov %s3298_s15  ;;  %21 = sbr.rel (!%p19_p3) target bundleno = 3 (0x3), region = 105 }
 0x38a   :  { %2486 = vsyncpa [#allocation4], 1 }
 0x38b   :  { %2488 = vsyncpa [#allocation4 + $0x1], 1 }

</bundles_post_ra>
